<compile_context>
chip_gen: v6e
topology: v6e:2x2x1
jax: 0.10.0
libtpu: 0.0.40
codegen_flags: <defaults>
</compile_context>

<pallas_src>
import functools
import math

import jax
import jax.numpy as jnp
from jax import lax
from jax.experimental import pallas as pl
from jax.experimental.pallas import tpu as pltpu


# ---------------------------------------------------------------------------
# Kernel 1: fused K/V 1x1-conv projections (run once per batch element)
# ---------------------------------------------------------------------------

def _project_kv_kernel(k_ref, v_ref, wk_ref, wv_ref, bk_ref, bv_ref,
                       ko_ref, vo_ref):
    """One (batch, s-tile) step: (C, C) @ (C, t) + (C, 1) for K and V."""
    k = jnp.dot(wk_ref[...], k_ref[...],
                preferred_element_type=jnp.float32) + bk_ref[...]
    v = jnp.dot(wv_ref[...], v_ref[...],
                preferred_element_type=jnp.float32) + bv_ref[...]
    ko_ref[...] = k.astype(ko_ref.dtype)
    vo_ref[...] = v.astype(vo_ref.dtype)


# ---------------------------------------------------------------------------
# Kernel 2: fused Q projection + flash attention (online softmax)
# ---------------------------------------------------------------------------

def _attention_kernel(q_ref, k_ref, v_ref, wq_ref, bq_ref, o_ref,
                      q_scratch, m_scratch, l_scratch, acc_scratch,
                      *, s_valid):
    """One (batch, q-tile, kv-tile) grid step, channel-major layout.

    q_ref        : (C, tq)  raw (unprojected) query pixels
    k_ref, v_ref : (C, tk)  pre-projected key / value pixels
    wq_ref       : (C, C)   query projection weight (Cout, Cin)
    bq_ref       : (C, 1)   query projection bias
    o_ref        : (C, tq)  output block (written on the last kv step)
    q_scratch    : (C, tq)  f32 projected Q tile  (hoisted out of the kv loop)
    m/l_scratch  : (1, tq)  f32 lane-dense online-softmax statistics
    acc_scratch  : (C, tq)  f32 output accumulator
    """
    ki = pl.program_id(2)
    tk = k_ref.shape[-1]

    @pl.when(ki == 0)
    def _init():
        # 1x1-conv Q projection, once per (batch, q-tile) -- NOT per kv step.
        q_scratch[...] = (
            jnp.dot(wq_ref[...], q_ref[...], preferred_element_type=jnp.float32)
            + bq_ref[...])
        m_scratch[...] = jnp.full(m_scratch.shape, -jnp.inf, m_scratch.dtype)
        l_scratch[...] = jnp.zeros(l_scratch.shape, l_scratch.dtype)
        acc_scratch[...] = jnp.zeros(acc_scratch.shape, acc_scratch.dtype)

    k = k_ref[...]                               # (C, tk)
    v = v_ref[...]                               # (C, tk)
    q = q_scratch[...].astype(k.dtype)           # (C, tq); bf16 cast if enabled

    # Transposed scores (tk, tq): s_t[j, i] = sum_c k[c, j] * q[c, i].
    # (The reference module applies no 1/sqrt(d) scaling.)  Softmax runs over
    # the kv (sublane) axis so per-query stats stay lane-dense.
    s_t = lax.dot_general(k, q, (((0,), (0,)), ((), ())),
                          preferred_element_type=jnp.float32)

    if s_valid is not None:
        # Spatial size was padded to a 128 multiple: mask padded key columns.
        col = lax.broadcasted_iota(jnp.int32, s_t.shape, 0) + ki * tk
        s_t = jnp.where(col < s_valid, s_t, -jnp.inf)

    m_prev = m_scratch[...]                                       # (1, tq)
    m_new = jnp.maximum(m_prev, jnp.max(s_t, axis=0, keepdims=True))
    alpha = jnp.exp(m_prev - m_new)                               # (1, tq)
    p = jnp.exp(s_t - m_new)                                      # (tk, tq)
    l_scratch[...] = alpha * l_scratch[...] + jnp.sum(p, axis=0, keepdims=True)
    # acc[c, i] += sum_j v[c, j] * p[j, i]
    acc_scratch[...] = alpha * acc_scratch[...] + jnp.dot(
        v, p.astype(v.dtype), preferred_element_type=jnp.float32)
    m_scratch[...] = m_new

    @pl.when(ki == pl.num_programs(2) - 1)
    def _finalize():
        l = l_scratch[...]
        inv_l = pl.reciprocal(l, approx=True)      # EUP slot (nearly free)
        inv_l = inv_l * (2.0 - l * inv_l)          # one Newton step: f32 accurate
        o_ref[...] = (acc_scratch[...] * inv_l).astype(o_ref.dtype)


# ---------------------------------------------------------------------------
# Tiling heuristics
# ---------------------------------------------------------------------------

def _pick_spatial_tile(s_padded, c, batch):
    """Choose the (q == kv) spatial tile.

    s_padded is a multiple of 128.  The tile must be a 128-multiple divisor of
    s_padded (lane-dense blocks).  The cap keeps the attention kernel's VMEM
    working set comfortably inside the smallest scoped-VMEM budgets across
    generations (v5e 16 MiB default, v7x 64 MiB physical / 32 MiB default).
    """
    budget = 12 * 1024 * 1024  # bytes (conservative across v5e / v6e / v7x)

    def vmem_bytes(t):
        blocks = 2 * (c * t + 2 * c * t + c * t)     # dbl-buffered q, k, v, out
        weights = 2 * (c * c + c)                    # wq, bq
        scratch = 2 * c * t + 2 * t                  # q_proj, acc, m, l
        temps = 3 * t * t                            # s_t, p + slack
        return 4 * (blocks + weights + scratch + temps)

    cap = 512 if c < 512 else 256                    # smaller tiles for big C
    tile = 128
    t = 128
    while t <= min(cap, s_padded):
        if s_padded % t == 0 and vmem_bytes(t) <= budget:
            tile = t
        t += 128

    # v7x shards the "parallel" grid axes over 2 TensorCores: keep at least
    # two units of parallel work (batch * n_q >= 2) when possible.
    if batch * (s_padded // tile) < 2 and tile > 128:
        tile = 128
    return tile


# ---------------------------------------------------------------------------
# Wrapper
# ---------------------------------------------------------------------------

def cross_attention(query_input, key_input, value_input, params, *,
                    matmul_dtype=None):
    """Forward pass of the PyTorch CrossAttention module.

    query_input/key_input/value_input: (B, C, H, W) float32 (NCHW).
    Returns: (B, C, H, W) float32.
    """
    B, C, H, W = query_input.shape
    S = H * W
    S_pad = ((S + 127) // 128) * 128

    if matmul_dtype is None:
        # bf16 MXU operands only when the matmuls are large enough to be
        # MXU-bound; small C stays f32 to match the f32 reference closely.
        matmul_dtype = jnp.bfloat16 if C >= 128 else jnp.float32

    # Channel-major (B, C, S): pure reshape, no transposes anywhere.
    def to_cs(x):
        x = x.reshape(B, C, S).astype(jnp.float32)
        if S_pad != S:
            x = jnp.pad(x, ((0, 0), (0, 0), (0, S_pad - S)))
        return x

    q_in, k_in, v_in = map(to_cs, (query_input, key_input, value_input))

    # Conv2d 1x1 weights are (Cout, Cin); used directly as W @ x (no transpose).
    wq = params["wq"].astype(jnp.float32)
    wk = params["wk"].astype(jnp.float32)
    wv = params["wv"].astype(jnp.float32)
    bq = params["bq"].astype(jnp.float32).reshape(C, 1)
    bk = params["bk"].astype(jnp.float32).reshape(C, 1)
    bv = params["bv"].astype(jnp.float32).reshape(C, 1)

    tile = _pick_spatial_tile(S_pad, C, B)
    tq = tk = tile
    n_q, n_kv = S_pad // tq, S_pad // tk
    vmem_limit = 32 * 1024 * 1024   # safe on v5e/v6e/v7x; raises v5e's 16 MiB

    # --- K/V projections: once per batch element (not once per q-tile). ----
    k_proj, v_proj = pl.pallas_call(
        _project_kv_kernel,
        out_shape=(jax.ShapeDtypeStruct((B, C, S_pad), matmul_dtype),
                   jax.ShapeDtypeStruct((B, C, S_pad), matmul_dtype)),
        grid_spec=pltpu.PrefetchScalarGridSpec(
            num_scalar_prefetch=0,
            grid=(B, n_kv),
            in_specs=[
                pl.BlockSpec((None, C, tk), lambda b, si: (b, 0, si)),
                pl.BlockSpec((None, C, tk), lambda b, si: (b, 0, si)),
                pl.BlockSpec((C, C), lambda b, si: (0, 0)),
                pl.BlockSpec((C, C), lambda b, si: (0, 0)),
                pl.BlockSpec((C, 1), lambda b, si: (0, 0)),
                pl.BlockSpec((C, 1), lambda b, si: (0, 0)),
            ],
            out_specs=(pl.BlockSpec((None, C, tk), lambda b, si: (b, 0, si)),
                       pl.BlockSpec((None, C, tk), lambda b, si: (b, 0, si))),
        ),
        compiler_params=pltpu.CompilerParams(
            dimension_semantics=("parallel", "parallel"),
            vmem_limit_bytes=vmem_limit),
    )(k_in, v_in, wk, wv, bk, bv)

    # --- fused Q projection + flash attention. -----------------------------
    kernel = functools.partial(
        _attention_kernel, s_valid=None if S_pad == S else S)

    out = pl.pallas_call(
        kernel,
        out_shape=jax.ShapeDtypeStruct((B, C, S_pad), jnp.float32),
        grid_spec=pltpu.PrefetchScalarGridSpec(
            num_scalar_prefetch=0,
            grid=(B, n_q, n_kv),
            in_specs=[
                pl.BlockSpec((None, C, tq), lambda b, qi, ki: (b, 0, qi)),  # raw Q
                pl.BlockSpec((None, C, tk), lambda b, qi, ki: (b, 0, ki)),  # K proj
                pl.BlockSpec((None, C, tk), lambda b, qi, ki: (b, 0, ki)),  # V proj
                pl.BlockSpec((C, C), lambda b, qi, ki: (0, 0)),             # Wq
                pl.BlockSpec((C, 1), lambda b, qi, ki: (0, 0)),             # bq
            ],
            out_specs=pl.BlockSpec((None, C, tq), lambda b, qi, ki: (b, 0, qi)),
            scratch_shapes=[
                pltpu.VMEM((C, tq), jnp.float32),   # projected Q tile
                pltpu.VMEM((1, tq), jnp.float32),   # running max (lane-dense)
                pltpu.VMEM((1, tq), jnp.float32),   # running denom (lane-dense)
                pltpu.VMEM((C, tq), jnp.float32),   # output accumulator
            ],
        ),
        compiler_params=pltpu.CompilerParams(
            dimension_semantics=("parallel", "parallel", "arbitrary"),
            vmem_limit_bytes=vmem_limit),
    )(q_in, k_proj, v_proj, wq, bq)

    if S_pad != S:
        out = out[:, :, :S]
    return out.reshape(B, C, H, W)


# ---------------------------------------------------------------------------
# Parameters (deterministic, PyTorch Conv2d default-init distribution)
# ---------------------------------------------------------------------------

def make_params(in_channels, key):
    keys = jax.random.split(key, 6)
    bound = 1.0 / math.sqrt(in_channels)   # kaiming_uniform(a=sqrt(5)), fan_in=C

    def u(k, shape):
        return jax.random.uniform(k, shape, jnp.float32, -bound, bound)

    return {
        "wq": u(keys[0], (in_channels, in_channels)),   # (Cout, Cin), 1x1 kernel
        "bq": u(keys[1], (in_channels,)),
        "wk": u(keys[2], (in_channels, in_channels)),
        "bk": u(keys[3], (in_channels,)),
        "wv": u(keys[4], (in_channels, in_channels)),
        "bv": u(keys[5], (in_channels,)),
    }


# ---------------------------------------------------------------------------
# Pure-JAX reference (mirrors the PyTorch forward exactly)
# ---------------------------------------------------------------------------

def cross_attention_ref(q_x, k_x, v_x, params):
    B, C, H, W = q_x.shape
    S = H * W

    def proj(x, w, b):
        xc = x.reshape(B, C, S).astype(jnp.float32)
        return jnp.einsum("oc,bcs->bos", w, xc) + b[None, :, None]

    q = proj(q_x, params["wq"], params["bq"])        # (B, C, S)
    k = proj(k_x, params["wk"], params["bk"])
    v = proj(v_x, params["wv"], params["bv"])
    scores = jnp.einsum("bci,bcj->bij", q, k)        # (B, S, S)
    attn = jax.nn.softmax(scores, axis=-1)
    out = jnp.einsum("bij,bcj->bci", attn, v)        # (B, C, S)
    return out.reshape(B, C, H, W)


# ---------------------------------------------------------------------------
# Main
# ---------------------------------------------------------------------------

if __name__ == "__main__":
    in_channels, B, H, W = 4, 2, 16, 16

    root = jax.random.PRNGKey(0)
    kp, kq, kk, kv = jax.random.split(root, 4)
    params = make_params(in_channels, kp)

    q_x = jax.random.normal(kq, (B, in_channels, H, W), jnp.float32)
    k_x = jax.random.normal(kk, (B, in_channels, H, W), jnp.float32)
    v_x = jax.random.normal(kv, (B, in_channels, H, W), jnp.float32)

    fwd = jax.jit(cross_attention)
    out = jax.block_until_ready(fwd(q_x, k_x, v_x, params))

    assert out.shape == (B, in_channels, H, W), out.shape
    assert bool(jnp.all(jnp.isfinite(out)))

    ref = cross_attention_ref(q_x, k_x, v_x, params)
    max_err = float(jnp.max(jnp.abs(out - ref)))
    assert max_err < 1e-3, f"max abs error {max_err}"

    print("KERNEL_OK")
</pallas_src>

<mosaic_0001>
module attributes {stable_mosaic.version = 11 : i64} {
  func.func @_project_kv_kernel(%arg0: i32, %arg1: i32, %arg2: memref<1x4x256xf32, #tpu.memory_space<vmem>>, %arg3: memref<1x4x256xf32, #tpu.memory_space<vmem>>, %arg4: memref<4x4xf32, #tpu.memory_space<vmem>>, %arg5: memref<4x4xf32, #tpu.memory_space<vmem>>, %arg6: memref<4x1xf32, #tpu.memory_space<vmem>>, %arg7: memref<4x1xf32, #tpu.memory_space<vmem>>, %arg8: memref<1x4x256xf32, #tpu.memory_space<vmem>>, %arg9: memref<1x4x256xf32, #tpu.memory_space<vmem>>) attributes {dimension_semantics = [#tpu.dimension_semantics<parallel>, #tpu.dimension_semantics<parallel>], iteration_bounds = array<i64: 2, 1>, scalar_prefetch = 0 : i64, scratch_operands = 0 : i64, tpu.core_type = #tpu.core_type<tc>, window_params = [{transform_indices = @transform_0, window_bounds = array<i64: 1, 4, 256>}, {transform_indices = @transform_1, window_bounds = array<i64: 1, 4, 256>}, {pipeline_mode = #tpu.pipeline_mode<synchronous>, transform_indices = @transform_2, window_bounds = array<i64: 4, 4>}, {pipeline_mode = #tpu.pipeline_mode<synchronous>, transform_indices = @transform_3, window_bounds = array<i64: 4, 4>}, {pipeline_mode = #tpu.pipeline_mode<synchronous>, transform_indices = @transform_4, window_bounds = array<i64: 4, 1>}, {pipeline_mode = #tpu.pipeline_mode<synchronous>, transform_indices = @transform_5, window_bounds = array<i64: 4, 1>}, {transform_indices = @transform_6, window_bounds = array<i64: 1, 4, 256>}, {transform_indices = @transform_7, window_bounds = array<i64: 1, 4, 256>}]} {
    %c0 = arith.constant 0 : index
    %c0_0 = arith.constant 0 : index
    %0 = vector.load %arg4[%c0, %c0_0] : memref<4x4xf32, #tpu.memory_space<vmem>>, vector<4x4xf32>
    %c0_1 = arith.constant 0 : index
    %c0_2 = arith.constant 0 : index
    %c0_3 = arith.constant 0 : index
    %1 = vector.load %arg2[%c0_1, %c0_2, %c0_3] : memref<1x4x256xf32, #tpu.memory_space<vmem>>, vector<1x4x256xf32>
    %2 = vector.shape_cast %1 : vector<1x4x256xf32> to vector<4x256xf32>
    %cst = arith.constant dense<0.000000e+00> : vector<4x256xf32>
    %3 = tpu.matmul %0, %2, %cst {dimension_numbers = #tpu.dot_dimension_numbers<[1], [0], [0], [1], [0, 0, 1, 1], [], []>} : vector<4x4xf32>, vector<4x256xf32>, vector<4x256xf32> -> vector<4x256xf32>
    %c0_4 = arith.constant 0 : index
    %c0_5 = arith.constant 0 : index
    %4 = vector.load %arg6[%c0_4, %c0_5] : memref<4x1xf32, #tpu.memory_space<vmem>>, vector<4x1xf32>
    %5 = vector.broadcast %4 : vector<4x1xf32> to vector<4x256xf32>
    %6 = arith.addf %3, %5 : vector<4x256xf32>
    %c0_6 = arith.constant 0 : index
    %c0_7 = arith.constant 0 : index
    %7 = vector.load %arg5[%c0_6, %c0_7] : memref<4x4xf32, #tpu.memory_space<vmem>>, vector<4x4xf32>
    %c0_8 = arith.constant 0 : index
    %c0_9 = arith.constant 0 : index
    %c0_10 = arith.constant 0 : index
    %8 = vector.load %arg3[%c0_8, %c0_9, %c0_10] : memref<1x4x256xf32, #tpu.memory_space<vmem>>, vector<1x4x256xf32>
    %9 = vector.shape_cast %8 : vector<1x4x256xf32> to vector<4x256xf32>
    %cst_11 = arith.constant dense<0.000000e+00> : vector<4x256xf32>
    %10 = tpu.matmul %7, %9, %cst_11 {dimension_numbers = #tpu.dot_dimension_numbers<[1], [0], [0], [1], [0, 0, 1, 1], [], []>} : vector<4x4xf32>, vector<4x256xf32>, vector<4x256xf32> -> vector<4x256xf32>
    %c0_12 = arith.constant 0 : index
    %c0_13 = arith.constant 0 : index
    %11 = vector.load %arg7[%c0_12, %c0_13] : memref<4x1xf32, #tpu.memory_space<vmem>>, vector<4x1xf32>
    %12 = vector.broadcast %11 : vector<4x1xf32> to vector<4x256xf32>
    %13 = arith.addf %10, %12 : vector<4x256xf32>
    %c0_14 = arith.constant 0 : index
    %c0_15 = arith.constant 0 : index
    %c0_16 = arith.constant 0 : index
    %14 = vector.load %arg8[%c0_14, %c0_15, %c0_16] : memref<1x4x256xf32, #tpu.memory_space<vmem>>, vector<1x4x256xf32>
    %15 = vector.shape_cast %14 : vector<1x4x256xf32> to vector<4x256xf32>
    %16 = vector.shape_cast %6 : vector<4x256xf32> to vector<1x4x256xf32>
    tpu.vector_store %arg8[%c0_14, %c0_15, %c0_16], %16 {strides = array<i32>} : memref<1x4x256xf32, #tpu.memory_space<vmem>>, vector<1x4x256xf32>,
    %c0_17 = arith.constant 0 : index
    %c0_18 = arith.constant 0 : index
    %c0_19 = arith.constant 0 : index
    %17 = vector.load %arg9[%c0_17, %c0_18, %c0_19] : memref<1x4x256xf32, #tpu.memory_space<vmem>>, vector<1x4x256xf32>
    %18 = vector.shape_cast %17 : vector<1x4x256xf32> to vector<4x256xf32>
    %19 = vector.shape_cast %13 : vector<4x256xf32> to vector<1x4x256xf32>
    tpu.vector_store %arg9[%c0_17, %c0_18, %c0_19], %19 {strides = array<i32>} : memref<1x4x256xf32, #tpu.memory_space<vmem>>, vector<1x4x256xf32>,
    return
  }
  func.func @transform_0(%arg0: i32, %arg1: i32) -> (i32, i32, i32) {
    %c0_i32 = arith.constant 0 : i32
    %c0_i32_0 = arith.constant 0 : i32
    return %arg0, %c0_i32, %arg1 : i32, i32, i32
  }
  func.func @transform_1(%arg0: i32, %arg1: i32) -> (i32, i32, i32) {
    %c0_i32 = arith.constant 0 : i32
    %c0_i32_0 = arith.constant 0 : i32
    return %arg0, %c0_i32, %arg1 : i32, i32, i32
  }
  func.func @transform_2(%arg0: i32, %arg1: i32) -> (i32, i32) {
    %c0_i32 = arith.constant 0 : i32
    %c0_i32_0 = arith.constant 0 : i32
    %c0_i32_1 = arith.constant 0 : i32
    return %c0_i32, %c0_i32_0 : i32, i32
  }
  func.func @transform_3(%arg0: i32, %arg1: i32) -> (i32, i32) {
    %c0_i32 = arith.constant 0 : i32
    %c0_i32_0 = arith.constant 0 : i32
    %c0_i32_1 = arith.constant 0 : i32
    return %c0_i32, %c0_i32_0 : i32, i32
  }
  func.func @transform_4(%arg0: i32, %arg1: i32) -> (i32, i32) {
    %c0_i32 = arith.constant 0 : i32
    %c0_i32_0 = arith.constant 0 : i32
    %c0_i32_1 = arith.constant 0 : i32
    return %c0_i32, %c0_i32_0 : i32, i32
  }
  func.func @transform_5(%arg0: i32, %arg1: i32) -> (i32, i32) {
    %c0_i32 = arith.constant 0 : i32
    %c0_i32_0 = arith.constant 0 : i32
    %c0_i32_1 = arith.constant 0 : i32
    return %c0_i32, %c0_i32_0 : i32, i32
  }
  func.func @transform_6(%arg0: i32, %arg1: i32) -> (i32, i32, i32) {
    %c0_i32 = arith.constant 0 : i32
    %c0_i32_0 = arith.constant 0 : i32
    return %arg0, %c0_i32, %arg1 : i32, i32, i32
  }
  func.func @transform_7(%arg0: i32, %arg1: i32) -> (i32, i32, i32) {
    %c0_i32 = arith.constant 0 : i32
    %c0_i32_0 = arith.constant 0 : i32
    return %arg0, %c0_i32, %arg1 : i32, i32, i32
  }
}

module attributes {stable_mosaic.version = 11 : i64} {
  func.func @_attention_kernel(%arg0: i32, %arg1: i32, %arg2: i32, %arg3: memref<1x4x256xf32, #tpu.memory_space<vmem>>, %arg4: memref<1x4x256xf32, #tpu.memory_space<vmem>>, %arg5: memref<1x4x256xf32, #tpu.memory_space<vmem>>, %arg6: memref<4x4xf32, #tpu.memory_space<vmem>>, %arg7: memref<4x1xf32, #tpu.memory_space<vmem>>, %arg8: memref<1x4x256xf32, #tpu.memory_space<vmem>>, %arg9: memref<4x256xf32, #tpu.memory_space<vmem>>, %arg10: memref<1x256xf32, #tpu.memory_space<vmem>>, %arg11: memref<1x256xf32, #tpu.memory_space<vmem>>, %arg12: memref<4x256xf32, #tpu.memory_space<vmem>>) attributes {dimension_semantics = [#tpu.dimension_semantics<parallel>, #tpu.dimension_semantics<parallel>, #tpu.dimension_semantics<arbitrary>], iteration_bounds = array<i64: 2, 1, 1>, scalar_prefetch = 0 : i64, scratch_operands = 4 : i64, tpu.core_type = #tpu.core_type<tc>, window_params = [{transform_indices = @transform_0, window_bounds = array<i64: 1, 4, 256>}, {transform_indices = @transform_1, window_bounds = array<i64: 1, 4, 256>}, {transform_indices = @transform_2, window_bounds = array<i64: 1, 4, 256>}, {pipeline_mode = #tpu.pipeline_mode<synchronous>, transform_indices = @transform_3, window_bounds = array<i64: 4, 4>}, {pipeline_mode = #tpu.pipeline_mode<synchronous>, transform_indices = @transform_4, window_bounds = array<i64: 4, 1>}, {transform_indices = @transform_5, window_bounds = array<i64: 1, 4, 256>}]} {
    %c0_i32 = arith.constant 0 : i32
    %0 = arith.cmpi eq, %arg2, %c0_i32 : i32
    %1 = arith.extui %0 : i1 to i32
    %c0_i32_0 = arith.constant 0 : i32
    %2 = arith.cmpi ne, %1, %c0_i32_0 : i32
    scf.if %2 {
      %c0_25 = arith.constant 0 : index
      %c0_26 = arith.constant 0 : index
      %34 = vector.load %arg6[%c0_25, %c0_26] : memref<4x4xf32, #tpu.memory_space<vmem>>, vector<4x4xf32>
      %c0_27 = arith.constant 0 : index
      %c0_28 = arith.constant 0 : index
      %c0_29 = arith.constant 0 : index
      %35 = vector.load %arg3[%c0_27, %c0_28, %c0_29] : memref<1x4x256xf32, #tpu.memory_space<vmem>>, vector<1x4x256xf32>
      %36 = vector.shape_cast %35 : vector<1x4x256xf32> to vector<4x256xf32>
      %cst_30 = arith.constant dense<0.000000e+00> : vector<4x256xf32>
      %37 = tpu.matmul %34, %36, %cst_30 {dimension_numbers = #tpu.dot_dimension_numbers<[1], [0], [0], [1], [0, 0, 1, 1], [], []>} : vector<4x4xf32>, vector<4x256xf32>, vector<4x256xf32> -> vector<4x256xf32>
      %c0_31 = arith.constant 0 : index
      %c0_32 = arith.constant 0 : index
      %38 = vector.load %arg7[%c0_31, %c0_32] : memref<4x1xf32, #tpu.memory_space<vmem>>, vector<4x1xf32>
      %39 = vector.broadcast %38 : vector<4x1xf32> to vector<4x256xf32>
      %40 = arith.addf %37, %39 : vector<4x256xf32>
      %c0_33 = arith.constant 0 : index
      %c0_34 = arith.constant 0 : index
      %41 = vector.load %arg9[%c0_33, %c0_34] : memref<4x256xf32, #tpu.memory_space<vmem>>, vector<4x256xf32>
      tpu.vector_store %arg9[%c0_33, %c0_34], %40 {strides = array<i32>} : memref<4x256xf32, #tpu.memory_space<vmem>>, vector<4x256xf32>,
      %cst_35 = arith.constant 0xFF800000 : f32
      %42 = vector.broadcast %cst_35 : f32 to vector<1x256xf32>
      %c0_36 = arith.constant 0 : index
      %c0_37 = arith.constant 0 : index
      %43 = vector.load %arg10[%c0_36, %c0_37] : memref<1x256xf32, #tpu.memory_space<vmem>>, vector<1x256xf32>
      tpu.vector_store %arg10[%c0_36, %c0_37], %42 {strides = array<i32>} : memref<1x256xf32, #tpu.memory_space<vmem>>, vector<1x256xf32>,
      %cst_38 = arith.constant 0.000000e+00 : f32
      %44 = vector.broadcast %cst_38 : f32 to vector<1x256xf32>
      %c0_39 = arith.constant 0 : index
      %c0_40 = arith.constant 0 : index
      %45 = vector.load %arg11[%c0_39, %c0_40] : memref<1x256xf32, #tpu.memory_space<vmem>>, vector<1x256xf32>
      tpu.vector_store %arg11[%c0_39, %c0_40], %44 {strides = array<i32>} : memref<1x256xf32, #tpu.memory_space<vmem>>, vector<1x256xf32>,
      %cst_41 = arith.constant 0.000000e+00 : f32
      %46 = vector.broadcast %cst_41 : f32 to vector<4x256xf32>
      %c0_42 = arith.constant 0 : index
      %c0_43 = arith.constant 0 : index
      %47 = vector.load %arg12[%c0_42, %c0_43] : memref<4x256xf32, #tpu.memory_space<vmem>>, vector<4x256xf32>
      tpu.vector_store %arg12[%c0_42, %c0_43], %46 {strides = array<i32>} : memref<4x256xf32, #tpu.memory_space<vmem>>, vector<4x256xf32>,
    } else {
    }
    %c0 = arith.constant 0 : index
    %c0_1 = arith.constant 0 : index
    %c0_2 = arith.constant 0 : index
    %3 = vector.load %arg4[%c0, %c0_1, %c0_2] : memref<1x4x256xf32, #tpu.memory_space<vmem>>, vector<1x4x256xf32>
    %4 = vector.shape_cast %3 : vector<1x4x256xf32> to vector<4x256xf32>
    %c0_3 = arith.constant 0 : index
    %c0_4 = arith.constant 0 : index
    %c0_5 = arith.constant 0 : index
    %5 = vector.load %arg5[%c0_3, %c0_4, %c0_5] : memref<1x4x256xf32, #tpu.memory_space<vmem>>, vector<1x4x256xf32>
    %6 = vector.shape_cast %5 : vector<1x4x256xf32> to vector<4x256xf32>
    %c0_6 = arith.constant 0 : index
    %c0_7 = arith.constant 0 : index
    %7 = vector.load %arg9[%c0_6, %c0_7] : memref<4x256xf32, #tpu.memory_space<vmem>>, vector<4x256xf32>
    %cst = arith.constant dense<0.000000e+00> : vector<256x256xf32>
    %8 = tpu.matmul %4, %7, %cst {dimension_numbers = #tpu.dot_dimension_numbers<[0], [0], [1], [1], [0, 1, 1, 1], [], []>} : vector<4x256xf32>, vector<4x256xf32>, vector<256x256xf32> -> vector<256x256xf32>
    %c0_8 = arith.constant 0 : index
    %c0_9 = arith.constant 0 : index
    %9 = vector.load %arg10[%c0_8, %c0_9] : memref<1x256xf32, #tpu.memory_space<vmem>>, vector<1x256xf32>
    %cst_10 = arith.constant dense<0xFF800000> : vector<256xf32>
    %10 = vector.multi_reduction <maximumf>, %8, %cst_10 [0] : vector<256x256xf32> to vector<256xf32>
    %11 = vector.shape_cast %10 : vector<256xf32> to vector<1x256xf32>
    %12 = arith.maximumf %9, %11 : vector<1x256xf32>
    %13 = arith.subf %9, %12 : vector<1x256xf32>
    %14 = math.exp %13 : vector<1x256xf32>
    %15 = vector.broadcast %12 : vector<1x256xf32> to vector<256x256xf32>
    %16 = arith.subf %8, %15 : vector<256x256xf32>
    %17 = math.exp %16 : vector<256x256xf32>
    %c0_11 = arith.constant 0 : index
    %c0_12 = arith.constant 0 : index
    %18 = vector.load %arg11[%c0_11, %c0_12] : memref<1x256xf32, #tpu.memory_space<vmem>>, vector<1x256xf32>
    %19 = arith.mulf %14, %18 : vector<1x256xf32>
    %cst_13 = arith.constant dense<0.000000e+00> : vector<256xf32>
    %20 = vector.multi_reduction <add>, %17, %cst_13 [0] : vector<256x256xf32> to vector<256xf32>
    %21 = vector.shape_cast %20 : vector<256xf32> to vector<1x256xf32>
    %22 = arith.addf %19, %21 : vector<1x256xf32>
    %c0_14 = arith.constant 0 : index
    %c0_15 = arith.constant 0 : index
    %23 = vector.load %arg11[%c0_14, %c0_15] : memref<1x256xf32, #tpu.memory_space<vmem>>, vector<1x256xf32>
    tpu.vector_store %arg11[%c0_14, %c0_15], %22 {strides = array<i32>} : memref<1x256xf32, #tpu.memory_space<vmem>>, vector<1x256xf32>,
    %c0_16 = arith.constant 0 : index
    %c0_17 = arith.constant 0 : index
    %24 = vector.load %arg12[%c0_16, %c0_17] : memref<4x256xf32, #tpu.memory_space<vmem>>, vector<4x256xf32>
    %25 = vector.broadcast %14 : vector<1x256xf32> to vector<4x256xf32>
    %26 = arith.mulf %25, %24 : vector<4x256xf32>
    %cst_18 = arith.constant dense<0.000000e+00> : vector<4x256xf32>
    %27 = tpu.matmul %6, %17, %cst_18 {dimension_numbers = #tpu.dot_dimension_numbers<[1], [0], [0], [1], [0, 0, 1, 1], [], []>} : vector<4x256xf32>, vector<256x256xf32>, vector<4x256xf32> -> vector<4x256xf32>
    %28 = arith.addf %26, %27 : vector<4x256xf32>
    %c0_19 = arith.constant 0 : index
    %c0_20 = arith.constant 0 : index
    %29 = vector.load %arg12[%c0_19, %c0_20] : memref<4x256xf32, #tpu.memory_space<vmem>>, vector<4x256xf32>
    tpu.vector_store %arg12[%c0_19, %c0_20], %28 {strides = array<i32>} : memref<4x256xf32, #tpu.memory_space<vmem>>, vector<4x256xf32>,
    %c0_21 = arith.constant 0 : index
    %c0_22 = arith.constant 0 : index
    %30 = vector.load %arg10[%c0_21, %c0_22] : memref<1x256xf32, #tpu.memory_space<vmem>>, vector<1x256xf32>
    tpu.vector_store %arg10[%c0_21, %c0_22], %12 {strides = array<i32>} : memref<1x256xf32, #tpu.memory_space<vmem>>, vector<1x256xf32>,
    %c0_i32_23 = arith.constant 0 : i32
    %31 = arith.cmpi eq, %arg2, %c0_i32_23 : i32
    %32 = arith.extui %31 : i1 to i32
    %c0_i32_24 = arith.constant 0 : i32
    %33 = arith.cmpi ne, %32, %c0_i32_24 : i32
    scf.if %33 {
      %c0_25 = arith.constant 0 : index
      %c0_26 = arith.constant 0 : index
      %34 = vector.load %arg11[%c0_25, %c0_26] : memref<1x256xf32, #tpu.memory_space<vmem>>, vector<1x256xf32>
      %35 = tpu.reciprocal %34 {approx = true} : vector<1x256xf32> -> vector<1x256xf32>
      %36 = arith.mulf %34, %35 : vector<1x256xf32>
      %cst_27 = arith.constant 2.000000e+00 : f32
      %37 = vector.broadcast %cst_27 : f32 to vector<1x256xf32>
      %38 = arith.subf %37, %36 : vector<1x256xf32>
      %39 = arith.mulf %35, %38 : vector<1x256xf32>
      %c0_28 = arith.constant 0 : index
      %c0_29 = arith.constant 0 : index
      %40 = vector.load %arg12[%c0_28, %c0_29] : memref<4x256xf32, #tpu.memory_space<vmem>>, vector<4x256xf32>
      %41 = vector.broadcast %39 : vector<1x256xf32> to vector<4x256xf32>
      %42 = arith.mulf %40, %41 : vector<4x256xf32>
      %c0_30 = arith.constant 0 : index
      %c0_31 = arith.constant 0 : index
      %c0_32 = arith.constant 0 : index
      %43 = vector.load %arg8[%c0_30, %c0_31, %c0_32] : memref<1x4x256xf32, #tpu.memory_space<vmem>>, vector<1x4x256xf32>
      %44 = vector.shape_cast %43 : vector<1x4x256xf32> to vector<4x256xf32>
      %45 = vector.shape_cast %42 : vector<4x256xf32> to vector<1x4x256xf32>
      tpu.vector_store %arg8[%c0_30, %c0_31, %c0_32], %45 {strides = array<i32>} : memref<1x4x256xf32, #tpu.memory_space<vmem>>, vector<1x4x256xf32>,
    } else {
    }
    return
  }
  func.func @transform_0(%arg0: i32, %arg1: i32, %arg2: i32) -> (i32, i32, i32) {
    %c0_i32 = arith.constant 0 : i32
    %c0_i32_0 = arith.constant 0 : i32
    return %arg0, %c0_i32, %arg1 : i32, i32, i32
  }
  func.func @transform_1(%arg0: i32, %arg1: i32, %arg2: i32) -> (i32, i32, i32) {
    %c0_i32 = arith.constant 0 : i32
    %c0_i32_0 = arith.constant 0 : i32
    return %arg0, %c0_i32, %arg2 : i32, i32, i32
  }
  func.func @transform_2(%arg0: i32, %arg1: i32, %arg2: i32) -> (i32, i32, i32) {
    %c0_i32 = arith.constant 0 : i32
    %c0_i32_0 = arith.constant 0 : i32
    return %arg0, %c0_i32, %arg2 : i32, i32, i32
  }
  func.func @transform_3(%arg0: i32, %arg1: i32, %arg2: i32) -> (i32, i32) {
    %c0_i32 = arith.constant 0 : i32
    %c0_i32_0 = arith.constant 0 : i32
    %c0_i32_1 = arith.constant 0 : i32
    return %c0_i32, %c0_i32_0 : i32, i32
  }
  func.func @transform_4(%arg0: i32, %arg1: i32, %arg2: i32) -> (i32, i32) {
    %c0_i32 = arith.constant 0 : i32
    %c0_i32_0 = arith.constant 0 : i32
    %c0_i32_1 = arith.constant 0 : i32
    return %c0_i32, %c0_i32_0 : i32, i32
  }
  func.func @transform_5(%arg0: i32, %arg1: i32, %arg2: i32) -> (i32, i32, i32) {
    %c0_i32 = arith.constant 0 : i32
    %c0_i32_0 = arith.constant 0 : i32
    return %arg0, %c0_i32, %arg1 : i32, i32, i32
  }
}

</mosaic_0001>

<bundles_post_ra>
// kernel: cross_attention.2
= control target key start
LH: loop header
LB: loop body
LE: loop exit
PB: predicated region body
PF: predicated region fallthrough
CT: control target
= control target key end

     0   :  { %s841_s24 = smov 0   ;;  %s843_s25 = smov 0   ;;  %s898_s0 = inlined_call_operand.vmem [shape: f32[2,4,256], index: 0, kind: input, shape index: {}]   ;;  %s899_s1 = inlined_call_operand.vmem [shape: f32[2,4,256], index: 1, kind: input, shape index: {}]   ;;  %s900_s2 = inlined_call_operand.vmem [shape: f32[4,4], index: 2, kind: input, shape index: {}]   ;;  %s901_s3 = inlined_call_operand.vmem [shape: f32[4,4], index: 3, kind: input, shape index: {}]   ;;  %s902_s4 = inlined_call_operand.vmem [shape: f32[4,1], index: 4, kind: input, shape index: {}]   ;;  %s903_s5 = inlined_call_operand.vmem [shape: f32[4,1], index: 5, kind: input, shape index: {}]   ;;  %s904_s6 = inlined_call_operand.vmem [shape: f32[2,4,256], index: 6, kind: output, shape index: {0}]   ;;  %s905_s7 = inlined_call_operand.vmem [shape: f32[2,4,256], index: 7, kind: output, shape index: {1}]  }
   0x1   :  { %s845_s26 = smov 0  }
   0x2 LB: > { %s30_s27 = sadd.s32 1, %s793_s25  ;;  %p725_p0 = scmp.ge.s32.totalorder %s797_s26, 1  ;;  %s797_s26 = sphi %s845_s26, %s18_s26   ;;  %s793_s25 = sphi %s843_s25, %s907_s25   ;;  %s789_s24 = sphi %s841_s24, %s906_s24  }
   0x3   : > { %p32_p1 = scmp.ge.s32.totalorder %s30_s27, 2  ;;  %p280_p2 = scmp.lt.s32.totalorder %s797_s26, 3 }
   0x5   : > { %s909_s27 = smov (%p32_p1, %s30_s27), 0  ;;  %p281_p3 = pnand %p725_p0, %p280_p2 }
   0x6   : > { %p339_p4 = scmp.lt.s32.totalorder (!%p281_p3), %s789_s24, 1 }
   0x7   : > { %284 = sbr.rel (%p281_p3) target bundleno = 221 (0xdd), region = 44 }
   0xc   : > { %v799_v0 = vmov 0.0   ;;  %v380_v1 = vld [vmem:[%s902_s4] sm:$0xf]  ;;  %s911_s24 = smov (!%p339_p4, %s789_s24), 1  ;;  %v800_v2 = vmov 0   ;;  %vm392_vm0 = vcmask 1043456  }
   0xd   : > { %461 = vmatprep.mubr.f32.mxu0 %v799_v0  ;;  %549 = vmatprep.mubr.f32.mxu1 %v799_v0  ;;  %s862_s30 = sshll.u32 %s911_s24, 3  ;;  %v470_v3 = vld [vmem:[%s903_s5] sm:$0xf]  ;;  %vm388_vm1 = vcmask 31744  }
   0xe   : > { %772 = vset.pattern.permute.xlu0 %v800_v2  ;;  %s346_s12 = scalar_lea.vmem %s898_s0, %s862_s30  ;;  %s356_s15 = scalar_lea.vmem %s899_s1, %s862_s30  ;;  %v378_v8 = vld [vmem:[%s900_s2] sm:$0xf] }
   0xf   : > { %383 = vperm.xlu0 %772, %v380_v1   ;;  %v379_v4 = vld [vmem:[%s346_s12] sm:$0xff]  ;;  %s366_s22 = scalar_lea.vmem %s904_s6, %s862_s30  ;;  %s376_s28 = scalar_lea.vmem %s905_s7, %s862_s30 }
  0x10   : > { %v469_v5 = vld [vmem:[%s356_s15] sm:$0xff]  ;;  %v387_v6 = vcombine.high %v379_v4, %v379_v4 }
  0x11   : > { %v477_v7 = vcombine.high %v469_v5, %v469_v5  ;;  %v468_v9 = vld [vmem:[%s901_s3] sm:$0xf] }
  0x12   : > { %734 = vmatprep.subr.msk.mxu0 %vm392_vm0, %v387_v6 }
  0x13   : > { %473 = vperm.xlu0 %772, %v470_v3   ;;  %737 = vmatprep.subr.msk.mxu1 %vm392_vm0, %v477_v7 }
  0x14   : > { %735 = vmatpush1.msk.msra.mxu0 %vm392_vm0, %v379_v4  ;;  %738 = vmatpush1.msk.msra.mxu1 %vm392_vm0, %v469_v5 }
  0x15   : > { %736 = vmatmul.mubr.msk.f32.vlgmr.msra.gmra.mxu0 %vm388_vm1, %v378_v8  ;;  %739 = vmatmul.mubr.msk.f32.vlgmr.msra.gmra.mxu1 %vm388_vm1, %v468_v9 }
  0x8a   : > { %v384_v10 = vpop.permute.xlu0 %383 }
  0x8e   : > { %v474_v13 = vpop.permute.xlu0 %473 }
  0xd5   : > { %v463_v11 = vpop.f32.mrf.mxu0  ;;  %v551_v12 = vpop.f32.mrf.mxu1 }
  0xd6   : > { %v464_v16 = vadd.f32 %v463_v11, %v384_v10  ;;  %v552_v17 = vadd.f32 %v551_v12, %v474_v13 }
  0xd7   : > { %v465_v14 = vpop.f32.mrf.mxu0  ;;  %v553_v15 = vpop.f32.mrf.mxu1 }
  0xd8   : > { %v466_v18 = vadd.f32 %v465_v14, %v384_v10  ;;  %v554_v19 = vadd.f32 %v553_v15, %v474_v13 }
  0xda   : > { %v558_v20 = vcombine.low %v464_v16, %v466_v18  ;;  %v563_v21 = vcombine.low %v552_v17, %v554_v19 }
  0xdc   : > { %560 = vst [vmem:[%s366_s22] sm:$0xff] %v558_v20  ;;  %565 = vst [vmem:[%s376_s28] sm:$0xff] %v563_v21 }
  0xdd PF: > { %s18_s26 = sadd.s32 1, %s797_s26   ;;  %s906_s24 = smov %s793_s25 }
  0xde   : > { %p15_p5 = scmp.ge.s32.totalorder %s18_s26, 4   ;;  %s907_s25 = smov %s909_s27 }
  0xe0   :  { %17 = sbr.rel (!%p15_p5) target bundleno = 2 (0x2), region = 89 }

// kernel: cross_attention.3
= control target key start
LH: loop header
LB: loop body
LE: loop exit
PB: predicated region body
PF: predicated region fallthrough
CT: control target
= control target key end

     0   :  { %s1806_s18 = smov 0   ;;  %s1808_s19 = smov 0   ;;  %s2486_s0 = inlined_call_operand.vmem [shape: f32[2,4,256], index: 0, kind: input, shape index: {}]   ;;  %s2487_s1 = inlined_call_operand.vmem [shape: f32[2,4,256], index: 1, kind: input, shape index: {}]   ;;  %s2488_s2 = inlined_call_operand.vmem [shape: f32[2,4,256], index: 2, kind: input, shape index: {}]   ;;  %s2489_s3 = inlined_call_operand.vmem [shape: f32[4,4], index: 3, kind: input, shape index: {}]   ;;  %s2490_s4 = inlined_call_operand.vmem [shape: f32[4,1], index: 4, kind: input, shape index: {}]   ;;  %s2491_s5 = inlined_call_operand.vmem [shape: f32[2,4,256], index: 5, kind: output, shape index: {}]  }
   0x1   :  { %s1810_s20 = smov 0  }
   0x2 LB: > { %s34_s21 = sadd.s32 1, %s1766_s19  ;;  %p1531_p0 = scmp.ge.s32.totalorder %s1770_s20, 1  ;;  %s1770_s20 = sphi %s1810_s20, %s15_s20   ;;  %s1766_s19 = sphi %s1808_s19, %s2583_s19   ;;  %s1762_s18 = sphi %s1806_s18, %s2582_s18  }
   0x3   : > { %p36_p1 = scmp.ge.s32.totalorder %s34_s21, 2  ;;  %p249_p2 = scmp.lt.s32.totalorder %s1770_s20, 3 }
   0x5   : > { %s2585_s21 = smov (%p36_p1, %s34_s21), 0  ;;  %p250_p3 = pnand %p1531_p0, %p249_p2 }
   0x7   : > { %253 = sbr.rel (%p250_p3) target bundleno = 882 (0x372), region = 40 }
   0xc   : > { %p304_p4 = scmp.lt.s32.totalorder %s1762_s18, 1  ;;  %v2492_v0 = vmov 0.0   ;;  %v349_v1 = vld [vmem:[%s2490_s4] sm:$0xf]  ;;  %v1773_v2 = vmov 0   ;;  %vm361_vm0 = vcmask 1043456   ;;  %v2493_v53 = vlaneseq }
   0xd   : > { %430 = vmatprep.mubr.f32.mxu0 %v2492_v0  ;;  %687 = vmatprep.mubr.f32.mxu1 %v2492_v0  ;;  %v347_v7 = vld [vmem:[%s2489_s3] sm:$0xf]  ;;  %vm357_vm1 = vcmask 31744   ;;  %v1774_v56 = vmov -inf  }
   0xe   : > { %s2587_s18 = smov (!%p304_p4, %s1762_s18), 1  ;;  %1612 = vset.pattern.permute.xlu0 %v1773_v2  ;;  %vm1925_vm2 = vcmp.lt.s32.totalorder %v2493_v53, 256 }
   0xf   : > { %352 = vperm.xlu0 %1612, %v349_v1   ;;  %s1829_s24 = sshll.u32 %s2587_s18, 3  ;;  %446 = vst.msk [vmem:[#allocation3] sm:$0x3] %vm1925_vm2, %v1774_v56  ;;  %447 = vst.msk [vmem:[#allocation4] sm:$0x3] %vm1925_vm2, %v2492_v0 }
  0x10   : > { %s311_s27 = scalar_lea.vmem %s2486_s0, %s1829_s24  ;;  %s321_s30 = scalar_lea.vmem %s2487_s1, %s1829_s24 }
  0x11   : > { %v348_v3 = vld [vmem:[%s311_s27] sm:$0xff]  ;;  %s331_s10 = scalar_lea.vmem %s2488_s2, %s1829_s24  ;;  %s341_s13 = scalar_lea.vmem %s2491_s5, %s1829_s24 }
  0x12   : > { %v449_v4 = vld [vmem:[%s321_s30] sm:$0xff]  ;;  %v356_v5 = vcombine.high %v348_v3, %v348_v3 }
  0x13   : > { %v453_v6 = vcombine.high %v449_v4, %v449_v4 }
  0x14   : > { %1540 = vmatprep.subr.msk.mxu0 %vm361_vm0, %v356_v5 }
  0x15   : > { %487 = vxpose.xlu1.b32.start.end [1/1] (short) %v453_v6, 128  ;;  %1541 = vmatpush1.msk.msra.mxu0 %vm361_vm0, %v348_v3 }
  0x16   : > { %1542 = vmatmul.mubr.msk.f32.vlgmr.msra.gmra.mxu0 %vm357_vm1, %v347_v7 }
  0x2d   : > { %455 = vxpose.xlu0.b32.start.end [1/1] (short) %v449_v4, 128 }
  0x8a   : > { %v353_v8 = vpop.permute.xlu0 %352 }
  0x91   : > { %v503_v26 = vpop.trf.xlu1 }
  0x95   : > { %v504_v28 = vpop.trf.xlu1 }
  0x99   : > { %v505_v30 = vpop.trf.xlu1 }
  0x9d   : > { %v506_v32 = vpop.trf.xlu1 }
  0xa1   : > { %v507_v34 = vpop.trf.xlu1 }
  0xa5   : > { %v508_v36 = vpop.trf.xlu1 }
  0xa9   : > { %v471_v9 = vpop.trf.xlu0  ;;  %v509_v37 = vpop.trf.xlu1 }
  0xad   : > { %v472_v10 = vpop.trf.xlu0  ;;  %v510_v38 = vpop.trf.xlu1 }
  0xb1   : > { %v473_v11 = vpop.trf.xlu0  ;;  %v511_v39 = vpop.trf.xlu1 }
  0xb5   : > { %v474_v12 = vpop.trf.xlu0  ;;  %v512_v40 = vpop.trf.xlu1 }
  0xb9   : > { %v475_v14 = vpop.trf.xlu0  ;;  %v513_v41 = vpop.trf.xlu1 }
  0xbd   : > { %v476_v20 = vpop.trf.xlu0  ;;  %v514_v42 = vpop.trf.xlu1 }
  0xc1   : > { %v477_v21 = vpop.trf.xlu0  ;;  %v515_v43 = vpop.trf.xlu1 }
  0xc5   : > { %v478_v22 = vpop.trf.xlu0  ;;  %v516_v44 = vpop.trf.xlu1 }
  0xc9   : > { %v479_v23 = vpop.trf.xlu0  ;;  %v517_v45 = vpop.trf.xlu1 }
  0xcd   : > { %v480_v24 = vpop.trf.xlu0  ;;  %v518_v46 = vpop.trf.xlu1 }
  0xd1   : > { %v481_v25 = vpop.trf.xlu0 }
  0xd5   : > { %v482_v27 = vpop.trf.xlu0 }
  0xd6   : > { %v432_v13 = vpop.f32.mrf.mxu0 }
  0xd7   : > { %v433_v16 = vadd.f32 %v432_v13, %v353_v8 }
  0xd8   : > { %v434_v15 = vpop.f32.mrf.mxu0 }
  0xd9   : > { %v435_v17 = vadd.f32 %v434_v15, %v353_v8  ;;  %v483_v29 = vpop.trf.xlu0 }
  0xdb   : > { %v439_v18 = vcombine.low %v433_v16, %v435_v17  ;;  %v1583_v19 = vcombine.low %v435_v17, %v435_v17 }
  0xdd   : > { %1543 = vmatprep.subr.msk.mxu1 %vm361_vm0, %v1583_v19  ;;  %v484_v31 = vpop.trf.xlu0 }
  0xde   : > { %1544 = vmatpush1.msk.msra.mxu1 %vm361_vm0, %v439_v18 }
  0xdf   : > { %1545 = vmatmul.mubr.msk.f32.vlgmr.msra.gmra.mxu1 %vm357_vm1, %v471_v9 }
  0xe0   : > { %693 = vmatprep.mubr.f32.mxu1 %v2492_v0 }
  0xe1   : > { %v485_v33 = vpop.trf.xlu0 }
  0xe3   : > { %1546 = vmatmul.mubr.msk.f32.gmra.mxu1 %vm357_vm1, %v472_v10 }
  0xe4   : > { %699 = vmatprep.mubr.f32.mxu1 %v2492_v0 }
  0xe5   : > { %v486_v35 = vpop.trf.xlu0 }
  0xe7   : > { %1547 = vmatmul.mubr.msk.f32.gmra.mxu1 %vm357_vm1, %v473_v11 }
  0xe8   : > { %705 = vmatprep.mubr.f32.mxu1 %v2492_v0 }
  0xeb   : > { %1548 = vmatmul.mubr.msk.f32.gmra.mxu1 %vm357_vm1, %v474_v12 }
  0xec   : > { %711 = vmatprep.mubr.f32.mxu1 %v2492_v0 }
  0xef   : > { %1549 = vmatmul.mubr.msk.f32.gmra.mxu1 %vm357_vm1, %v475_v14 }
  0xf0   : > { %717 = vmatprep.mubr.f32.mxu1 %v2492_v0 }
  0xf3   : > { %1550 = vmatmul.mubr.msk.f32.gmra.mxu1 %vm357_vm1, %v476_v20 }
  0xf4   : > { %723 = vmatprep.mubr.f32.mxu1 %v2492_v0 }
  0xf7   : > { %1551 = vmatmul.mubr.msk.f32.gmra.mxu1 %vm357_vm1, %v477_v21 }
  0xf8   : > { %729 = vmatprep.mubr.f32.mxu1 %v2492_v0 }
  0xfb   : > { %1552 = vmatmul.mubr.msk.f32.gmra.mxu1 %vm357_vm1, %v478_v22 }
  0xfc   : > { %735 = vmatprep.mubr.f32.mxu1 %v2492_v0 }
  0xff   : > { %1553 = vmatmul.mubr.msk.f32.gmra.mxu1 %vm357_vm1, %v479_v23 }
 0x100   : > { %741 = vmatprep.mubr.f32.mxu1 %v2492_v0 }
 0x103   : > { %1554 = vmatmul.mubr.msk.f32.gmra.mxu1 %vm357_vm1, %v480_v24 }
 0x104   : > { %747 = vmatprep.mubr.f32.mxu1 %v2492_v0 }
 0x107   : > { %1555 = vmatmul.mubr.msk.f32.gmra.mxu1 %vm357_vm1, %v481_v25 }
 0x108   : > { %753 = vmatprep.mubr.f32.mxu1 %v2492_v0 }
 0x10b   : > { %1556 = vmatmul.mubr.msk.f32.gmra.mxu1 %vm357_vm1, %v482_v27 }
 0x10c   : > { %759 = vmatprep.mubr.f32.mxu1 %v2492_v0 }
 0x10f   : > { %1557 = vmatmul.mubr.msk.f32.gmra.mxu1 %vm357_vm1, %v483_v29 }
 0x110   : > { %765 = vmatprep.mubr.f32.mxu1 %v2492_v0 }
 0x113   : > { %1558 = vmatmul.mubr.msk.f32.gmra.mxu1 %vm357_vm1, %v484_v31 }
 0x114   : > { %771 = vmatprep.mubr.f32.mxu1 %v2492_v0 }
 0x117   : > { %1559 = vmatmul.mubr.msk.f32.gmra.mxu1 %vm357_vm1, %v485_v33 }
 0x118   : > { %777 = vmatprep.mubr.f32.mxu1 %v2492_v0 }
 0x11b   : > { %1560 = vmatmul.mubr.msk.f32.gmra.mxu1 %vm357_vm1, %v486_v35 }
 0x11c   : > { %783 = vmatprep.mubr.f32.mxu1 %v2492_v0 }
 0x11f   : > { %1561 = vmatmul.mubr.msk.f32.gmra.mxu1 %vm357_vm1, %v503_v26 }
 0x120   : > { %789 = vmatprep.mubr.f32.mxu1 %v2492_v0 }
 0x123   : > { %1562 = vmatmul.mubr.msk.f32.gmra.mxu1 %vm357_vm1, %v504_v28 }
 0x124   : > { %795 = vmatprep.mubr.f32.mxu1 %v2492_v0 }
 0x127   : > { %1563 = vmatmul.mubr.msk.f32.gmra.mxu1 %vm357_vm1, %v505_v30 }
 0x128   : > { %801 = vmatprep.mubr.f32.mxu1 %v2492_v0 }
 0x12b   : > { %1564 = vmatmul.mubr.msk.f32.gmra.mxu1 %vm357_vm1, %v506_v32 }
 0x12c   : > { %807 = vmatprep.mubr.f32.mxu1 %v2492_v0 }
 0x12f   : > { %1565 = vmatmul.mubr.msk.f32.gmra.mxu1 %vm357_vm1, %v507_v34 }
 0x130   : > { %813 = vmatprep.mubr.f32.mxu1 %v2492_v0 }
 0x133   : > { %1566 = vmatmul.mubr.msk.f32.gmra.mxu1 %vm357_vm1, %v508_v36 }
 0x134   : > { %819 = vmatprep.mubr.f32.mxu1 %v2492_v0 }
 0x137   : > { %1567 = vmatmul.mubr.msk.f32.gmra.mxu1 %vm357_vm1, %v509_v37 }
 0x138   : > { %825 = vmatprep.mubr.f32.mxu1 %v2492_v0 }
 0x13b   : > { %1568 = vmatmul.mubr.msk.f32.gmra.mxu1 %vm357_vm1, %v510_v38 }
 0x13c   : > { %831 = vmatprep.mubr.f32.mxu1 %v2492_v0 }
 0x13f   : > { %1569 = vmatmul.mubr.msk.f32.gmra.mxu1 %vm357_vm1, %v511_v39 }
 0x140   : > { %837 = vmatprep.mubr.f32.mxu1 %v2492_v0 }
 0x143   : > { %1570 = vmatmul.mubr.msk.f32.gmra.mxu1 %vm357_vm1, %v512_v40 }
 0x144   : > { %843 = vmatprep.mubr.f32.mxu1 %v2492_v0 }
 0x147   : > { %1571 = vmatmul.mubr.msk.f32.gmra.mxu1 %vm357_vm1, %v513_v41 }
 0x148   : > { %849 = vmatprep.mubr.f32.mxu1 %v2492_v0 }
 0x14b   : > { %1572 = vmatmul.mubr.msk.f32.gmra.mxu1 %vm357_vm1, %v514_v42 }
 0x14c   : > { %855 = vmatprep.mubr.f32.mxu1 %v2492_v0 }
 0x14f   : > { %1573 = vmatmul.mubr.msk.f32.gmra.mxu1 %vm357_vm1, %v515_v43 }
 0x150   : > { %861 = vmatprep.mubr.f32.mxu1 %v2492_v0 }
 0x153   : > { %1574 = vmatmul.mubr.msk.f32.gmra.mxu1 %vm357_vm1, %v516_v44 }
 0x154   : > { %867 = vmatprep.mubr.f32.mxu1 %v2492_v0 }
 0x157   : > { %1575 = vmatmul.mubr.msk.f32.gmra.mxu1 %vm357_vm1, %v517_v45 }
 0x158   : > { %873 = vmatprep.mubr.f32.mxu1 %v2492_v0 }
 0x15b   : > { %1576 = vmatmul.mubr.msk.f32.gmra.mxu1 %vm357_vm1, %v518_v46 }
 0x19f   : > { %v1910_v47 = vpop.f32.mrf.mxu1 }
 0x1a1   : > { %v1912_v48 = vpop.f32.mrf.mxu1 }
 0x1a3   : > { %v1914_v49 = vpop.f32.mrf.mxu1 }
 0x1a5   : > { %v1916_v50 = vpop.f32.mrf.mxu1 }
 0x1a7   : > { %v1918_v51 = vpop.f32.mrf.mxu1 }
 0x1a8   : > { %v881_v36 = vmax.f32 %v1910_v47, %v1918_v51 }
 0x1a9   : > { %v1920_v52 = vpop.f32.mrf.mxu1 }
 0x1aa   : > { %v918_v39 = vmax.f32 %v1912_v48, %v1920_v52 }
 0x1ab   : > { %v1922_v54 = vpop.f32.mrf.mxu1 }
 0x1ac   : > { %v882_v37 = vmax.f32 %v1914_v49, %v1922_v54 }
 0x1ad   : > { %v1934_v57 = vpop.f32.mrf.mxu1 }
 0x1ae   : > { %2525 = vst [vmem:[#allocation6_spill] sm:$0xff] %v1934_v57  ;;  %v919_v40 = vmax.f32 %v1916_v50, %v1934_v57 }
 0x1af   : > { %v1936_v58 = vpop.f32.mrf.mxu1 }
 0x1b0   : > { %v883_v41 = vmax.f32 %v881_v36, %v1936_v58 }
 0x1b1   : > { %v1938_v59 = vpop.f32.mrf.mxu1 }
 0x1b2   : > { %v920_v44 = vmax.f32 %v918_v39, %v1938_v59 }
 0x1b3   : > { %v1940_v60 = vpop.f32.mrf.mxu1 }
 0x1b4   : > { %2526 = vst [vmem:[#allocation7_spill] sm:$0xff] %v1940_v60  ;;  %v884_v42 = vmax.f32 %v882_v37, %v1940_v60 }
 0x1b5   : > { %v1942_v61 = vpop.f32.mrf.mxu1 }
 0x1b6   : > { %v921_v45 = vmax.f32 %v919_v40, %v1942_v61 }
 0x1b7   : > { %v1944_v62 = vpop.f32.mrf.mxu1 }
 0x1b8   : > { %v885_v46 = vmax.f32 %v883_v41, %v1944_v62 }
 0x1b9   : > { %v1946_v63 = vpop.f32.mrf.mxu1 }
 0x1ba   : > { %v922_v53 = vmax.f32 %v920_v44, %v1946_v63 }
 0x1bb   : > { %v1948_v1 = vpop.f32.mrf.mxu1 }
 0x1bc   : > { %2527 = vst [vmem:[#allocation8_spill] sm:$0xff] %v1948_v1  ;;  %v886_v56 = vmax.f32 %v884_v42, %v1948_v1 }
 0x1bd   : > { %v1950_v2 = vpop.f32.mrf.mxu1 }
 0x1be   : > { %v923_v57 = vmax.f32 %v921_v45, %v1950_v2 }
 0x1bf   : > { %v1952_v3 = vpop.f32.mrf.mxu1 }
 0x1c0   : > { %v887_v36 = vmax.f32 %v885_v46, %v1952_v3 }
 0x1c1   : > { %v1954_v4 = vpop.f32.mrf.mxu1 }
 0x1c2   : > { %v924_v39 = vmax.f32 %v922_v53, %v1954_v4 }
 0x1c3   : > { %v1956_v5 = vpop.f32.mrf.mxu1 }
 0x1c4   : > { %2528 = vst [vmem:[#allocation9_spill] sm:$0xff] %v1956_v5  ;;  %v888_v37 = vmax.f32 %v886_v56, %v1956_v5 }
 0x1c5   : > { %v1958_v6 = vpop.f32.mrf.mxu1 }
 0x1c6   : > { %v925_v40 = vmax.f32 %v923_v57, %v1958_v6 }
 0x1c7   : > { %v1960_v7 = vpop.f32.mrf.mxu1 }
 0x1c8   : > { %v889_v41 = vmax.f32 %v887_v36, %v1960_v7 }
 0x1c9   : > { %v1962_v8 = vpop.f32.mrf.mxu1 }
 0x1ca   : > { %v926_v44 = vmax.f32 %v924_v39, %v1962_v8 }
 0x1cb   : > { %v1964_v9 = vpop.f32.mrf.mxu1 }
 0x1cc   : > { %2529 = vst [vmem:[#allocation10_spill] sm:$0xff] %v1964_v9  ;;  %v890_v42 = vmax.f32 %v888_v37, %v1964_v9 }
 0x1cd   : > { %v1966_v10 = vpop.f32.mrf.mxu1 }
 0x1ce   : > { %v927_v45 = vmax.f32 %v925_v40, %v1966_v10 }
 0x1cf   : > { %v1968_v11 = vpop.f32.mrf.mxu1 }
 0x1d0   : > { %v891_v46 = vmax.f32 %v889_v41, %v1968_v11 }
 0x1d1   : > { %v1970_v12 = vpop.f32.mrf.mxu1 }
 0x1d2   : > { %v928_v53 = vmax.f32 %v926_v44, %v1970_v12 }
 0x1d3   : > { %v1972_v13 = vpop.f32.mrf.mxu1 }
 0x1d4   : > { %2530 = vst [vmem:[#allocation11_spill] sm:$0xff] %v1972_v13  ;;  %v892_v56 = vmax.f32 %v890_v42, %v1972_v13 }
 0x1d5   : > { %v1974_v14 = vpop.f32.mrf.mxu1 }
 0x1d6   : > { %v929_v57 = vmax.f32 %v927_v45, %v1974_v14 }
 0x1d7   : > { %v1976_v15 = vpop.f32.mrf.mxu1 }
 0x1d8   : > { %v893_v36 = vmax.f32 %v891_v46, %v1976_v15 }
 0x1d9   : > { %v1978_v16 = vpop.f32.mrf.mxu1 }
 0x1da   : > { %v930_v39 = vmax.f32 %v928_v53, %v1978_v16 }
 0x1db   : > { %v1980_v17 = vpop.f32.mrf.mxu1 }
 0x1dc   : > { %2531 = vst [vmem:[#allocation12_spill] sm:$0xff] %v1980_v17  ;;  %v894_v37 = vmax.f32 %v892_v56, %v1980_v17 }
 0x1dd   : > { %v1982_v18 = vpop.f32.mrf.mxu1 }
 0x1de   : > { %v931_v40 = vmax.f32 %v929_v57, %v1982_v18 }
 0x1df   : > { %v1984_v19 = vpop.f32.mrf.mxu1 }
 0x1e0   : > { %v895_v41 = vmax.f32 %v893_v36, %v1984_v19 }
 0x1e1   : > { %v1986_v20 = vpop.f32.mrf.mxu1 }
 0x1e2   : > { %v932_v44 = vmax.f32 %v930_v39, %v1986_v20 }
 0x1e3   : > { %v1988_v21 = vpop.f32.mrf.mxu1 }
 0x1e4   : > { %2532 = vst [vmem:[#allocation13_spill] sm:$0xff] %v1988_v21  ;;  %v896_v42 = vmax.f32 %v894_v37, %v1988_v21 }
 0x1e5   : > { %v1990_v22 = vpop.f32.mrf.mxu1 }
 0x1e6   : > { %v933_v45 = vmax.f32 %v931_v40, %v1990_v22 }
 0x1e7   : > { %v1992_v23 = vpop.f32.mrf.mxu1 }
 0x1e8   : > { %v897_v46 = vmax.f32 %v895_v41, %v1992_v23 }
 0x1e9   : > { %v1994_v24 = vpop.f32.mrf.mxu1 }
 0x1ea   : > { %v934_v53 = vmax.f32 %v932_v44, %v1994_v24 }
 0x1eb   : > { %v1996_v25 = vpop.f32.mrf.mxu1 }
 0x1ec   : > { %2533 = vst [vmem:[#allocation14_spill] sm:$0xff] %v1996_v25  ;;  %v898_v56 = vmax.f32 %v896_v42, %v1996_v25 }
 0x1ed   : > { %v1998_v26 = vpop.f32.mrf.mxu1 }
 0x1ee   : > { %v935_v57 = vmax.f32 %v933_v45, %v1998_v26 }
 0x1ef   : > { %v2000_v27 = vpop.f32.mrf.mxu1 }
 0x1f0   : > { %v899_v36 = vmax.f32 %v897_v46, %v2000_v27 }
 0x1f1   : > { %v2002_v28 = vpop.f32.mrf.mxu1 }
 0x1f2   : > { %v936_v39 = vmax.f32 %v934_v53, %v2002_v28 }
 0x1f3   : > { %v2004_v29 = vpop.f32.mrf.mxu1 }
 0x1f4   : > { %2534 = vst [vmem:[#allocation15_spill] sm:$0xff] %v2004_v29  ;;  %v900_v37 = vmax.f32 %v898_v56, %v2004_v29 }
 0x1f5   : > { %v2006_v30 = vpop.f32.mrf.mxu1 }
 0x1f6   : > { %v937_v40 = vmax.f32 %v935_v57, %v2006_v30 }
 0x1f7   : > { %v2008_v31 = vpop.f32.mrf.mxu1 }
 0x1f8   : > { %v901_v41 = vmax.f32 %v899_v36, %v2008_v31 }
 0x1f9   : > { %v2010_v32 = vpop.f32.mrf.mxu1 }
 0x1fa   : > { %v938_v44 = vmax.f32 %v936_v39, %v2010_v32 }
 0x1fb   : > { %v2012_v33 = vpop.f32.mrf.mxu1 }
 0x1fc   : > { %2535 = vst [vmem:[#allocation16_spill] sm:$0xff] %v2012_v33  ;;  %v902_v42 = vmax.f32 %v900_v37, %v2012_v33 }
 0x1fd   : > { %v2014_v34 = vpop.f32.mrf.mxu1 }
 0x1fe   : > { %v939_v45 = vmax.f32 %v937_v40, %v2014_v34 }
 0x1ff   : > { %v2016_v35 = vpop.f32.mrf.mxu1 }
 0x200   : > { %v903_v46 = vmax.f32 %v901_v41, %v2016_v35 }
 0x201   : > { %v2022_v38 = vpop.f32.mrf.mxu1 }
 0x202   : > { %2536 = vst [vmem:[#allocation17_spill] sm:$0xff] %v2022_v38  ;;  %v940_v53 = vmax.f32 %v938_v44, %v2022_v38 }
 0x203   : > { %v2030_v43 = vpop.f32.mrf.mxu1 }
 0x204   : > { %2537 = vst [vmem:[#allocation18_spill] sm:$0xff] %v2030_v43  ;;  %v904_v56 = vmax.f32 %v902_v42, %v2030_v43 }
 0x205   : > { %v2036_v0 = vpop.f32.mrf.mxu1 }
 0x206   : > { %2538 = vst [vmem:[#allocation19_spill] sm:$0xff] %v2036_v0  ;;  %v941_v57 = vmax.f32 %v939_v45, %v2036_v0 }
 0x207   : > { %v2042_v60 = vpop.f32.mrf.mxu1 }
 0x208   : > { %2539 = vst [vmem:[#allocation20_spill] sm:$0xff] %v2042_v60  ;;  %v905_v36 = vmax.f32 %v903_v46, %v2042_v60 }
 0x209   : > { %v2048_v1 = vpop.f32.mrf.mxu1 }
 0x20a   : > { %2540 = vst [vmem:[#allocation21_spill] sm:$0xff] %v2048_v1  ;;  %v942_v39 = vmax.f32 %v940_v53, %v2048_v1 }
 0x20b   : > { %v2054_v5 = vpop.f32.mrf.mxu1 }
 0x20c   : > { %2541 = vst [vmem:[#allocation22_spill] sm:$0xff] %v2054_v5  ;;  %v906_v37 = vmax.f32 %v904_v56, %v2054_v5 }
 0x20d   : > { %v2060_v9 = vpop.f32.mrf.mxu1 }
 0x20e   : > { %2542 = vst [vmem:[#allocation23_spill] sm:$0xff] %v2060_v9  ;;  %v943_v40 = vmax.f32 %v941_v57, %v2060_v9 }
 0x20f   : > { %v2066_v13 = vpop.f32.mrf.mxu1 }
 0x210   : > { %2543 = vst [vmem:[#allocation24_spill] sm:$0xff] %v2066_v13  ;;  %v907_v41 = vmax.f32 %v905_v36, %v2066_v13 }
 0x211   : > { %v2072_v17 = vpop.f32.mrf.mxu1 }
 0x212   : > { %2544 = vst [vmem:[#allocation25_spill] sm:$0xff] %v2072_v17  ;;  %v944_v44 = vmax.f32 %v942_v39, %v2072_v17  ;;  %v1775_v39 = vmov 1966171168  }
 0x213   : > { %v2078_v21 = vpop.f32.mrf.mxu1  ;;  %v959_v17 = vunpack.c.l.s4 %v1775_v39 }
 0x214   : > { %2545 = vst [vmem:[#allocation26_spill] sm:$0xff] %v2078_v21  ;;  %v908_v42 = vmax.f32 %v906_v37, %v2078_v21 }
 0x215   : > { %v2084_v25 = vpop.f32.mrf.mxu1 }
 0x216   : > { %2546 = vst [vmem:[#allocation27_spill] sm:$0xff] %v2084_v25  ;;  %v945_v45 = vmax.f32 %v943_v40, %v2084_v25 }
 0x217   : > { %v2090_v29 = vpop.f32.mrf.mxu1 }
 0x218   : > { %2547 = vst [vmem:[#allocation28_spill] sm:$0xff] %v2090_v29  ;;  %v909_v46 = vmax.f32 %v907_v41, %v2090_v29 }
 0x219   : > { %v2096_v33 = vpop.f32.mrf.mxu1 }
 0x21a   : > { %v946_v53 = vmax.f32 %v944_v44, %v2096_v33 }
 0x21b   : > { %v2102_v43 = vpop.f32.mrf.mxu1 }
 0x21c   : > { %2548 = vst [vmem:[#allocation29_spill] sm:$0xff] %v2102_v43  ;;  %v910_v56 = vmax.f32 %v908_v42, %v2102_v43  ;;  %v960_v42 = vunpack.c.0.s8 %v959_v17  ;;  %v2549_v43 = vlaneseq }
 0x21d   : > { %v2108_v5 = vpop.f32.mrf.mxu1 }
 0x21e   : > { %v911_v1 = vmax.f32 %v909_v46, %v910_v56  ;;  %v947_v57 = vmax.f32 %v945_v45, %v2108_v5  ;;  %v962_v0 = vshrl.u32 %v2549_v43, 7 }
 0x220   : > { %v912_v36 = vrot.slane %v911_v1, 4  ;;  %v948_v13 = vmax.f32 %v946_v53, %v947_v57  ;;  %v2113_v56 = vsub.s32 %v960_v42, %v962_v0  ;;  %v2116_v53 = vld [vmem:[#allocation3] sm:$0x3]  ;;  %v2127_v17 = vsub.s32 0, %v962_v0 }
 0x222   : > { %v913_v37 = vmax.f32 %v911_v1, %v912_v36  ;;  %v949_v21 = vrot.slane %v948_v13, 4  ;;  %2550 = vst [vmem:[#allocation30_spill] sm:$0xff] %v2127_v17 }
 0x224   : > { %v914_v9 = vrot.slane %v913_v37, 2  ;;  %v950_v60 = vmax.f32 %v948_v13, %v949_v21  ;;  %v2129_v21 = vsub.s32 1, %v962_v0 }
 0x226   : > { %v915_v40 = vmax.f32 %v913_v37, %v914_v9  ;;  %v951_v25 = vrot.slane %v950_v60, 2  ;;  %2551 = vst [vmem:[#allocation31_spill] sm:$0xff] %v2129_v21 }
 0x228   : > { %v916_v41 = vrot.slane %v915_v40, 1  ;;  %v952_v29 = vmax.f32 %v950_v60, %v951_v25 }
 0x22a   : > { %v953_v38 = vrot.slane %v952_v29, 1  ;;  %v917_v44 = vmax.f32 %v915_v40, %v916_v41 }
 0x22c   : > { %v954_v46 = vmax.f32 %v952_v29, %v953_v38 }
 0x22e   : > { %v957_v45 = vcombine.low %v917_v44, %v954_v46  ;;  %v2553_v46 = vld [vmem:[#allocation7_spill] sm:$0xff] }
 0x230   : > { %v964_v1 = vrot.slane %v957_v45, %v2113_v56 }
 0x232   : > { %v971_v13 = vrot.slane %v964_v1, %v2113_v56 }
 0x234   : > { %v2120_v9 = vmax.f32 %v2116_v53, %v971_v13 }
 0x236   : > { %1378 = vst.msk [vmem:[#allocation3] sm:$0x3] %vm1925_vm2, %v2120_v9  ;;  %v2133_v25 = vrot.slane %v2120_v9, %v2127_v17  ;;  %v2137_v29 = vrot.slane %v2120_v9, %v2129_v21 }
 0x238   : > { %v988_v38 = vsub.f32 %v1910_v47, %v2133_v25  ;;  %v989_v43 = vsub.f32 %v1912_v48, %v2137_v29  ;;  %v990_v57 = vsub.f32 %v1914_v49, %v2133_v25  ;;  %v991_v0 = vsub.f32 %v1916_v50, %v2137_v29  ;;  %v2552_v48 = vld [vmem:[#allocation6_spill] sm:$0xff] }
 0x239   : > { %v992_v36 = vsub.f32 %v1918_v51, %v2133_v25  ;;  %v993_v37 = vsub.f32 %v1920_v52, %v2137_v29  ;;  %v994_v47 = vsub.f32 %v1922_v54, %v2133_v25  ;;  %v995_v42 = vsub.f32 %v2552_v48, %v2137_v29 }
 0x23a   : > { %v1052_v39 = vmul.f32 1.442695, %v988_v38  ;;  %v1054_v40 = vmul.f32 1.442695, %v989_v43  ;;  %v1056_v41 = vmul.f32 1.442695, %v990_v57  ;;  %v996_v49 = vsub.f32 %v1936_v58, %v2133_v25 }
 0x23b   : > { %v1058_v44 = vmul.f32 1.442695, %v991_v0  ;;  %v1060_v50 = vmul.f32 1.442695, %v992_v36  ;;  %v997_v51 = vsub.f32 %v1938_v59, %v2137_v29  ;;  %v1062_v52 = vmul.f32 1.442695, %v993_v37 }
 0x23c   : > { %1616 = vpow2.f32 %v1052_v39  ;;  %v998_v45 = vsub.f32 %v2553_v46, %v2133_v25  ;;  %v1064_v54 = vmul.f32 1.442695, %v994_v47  ;;  %v999_v1 = vsub.f32 %v1942_v61, %v2137_v29  ;;  %v2554_v57 = vld [vmem:[#allocation8_spill] sm:$0xff]  ;;  %v2555_v47 = vld [vmem:[#allocation9_spill] sm:$0xff] }
 0x23d   : > { %1618 = vpow2.f32 %v1054_v40  ;;  %v1066_v13 = vmul.f32 1.442695, %v995_v42  ;;  %v1000_v58 = vsub.f32 %v1944_v62, %v2133_v25  ;;  %v1068_v38 = vmul.f32 1.442695, %v996_v49 }
 0x23e   : > { %1620 = vpow2.f32 %v1056_v41  ;;  %v1001_v59 = vsub.f32 %v1946_v63, %v2137_v29  ;;  %v1070_v43 = vmul.f32 1.442695, %v997_v51  ;;  %v1002_v0 = vsub.f32 %v2554_v57, %v2133_v25 }
 0x23f   : > { %1622 = vpow2.f32 %v1058_v44  ;;  %v1072_v36 = vmul.f32 1.442695, %v998_v45  ;;  %v1003_v61 = vsub.f32 %v1950_v2, %v2137_v29  ;;  %v1074_v37 = vmul.f32 1.442695, %v999_v1 }
 0x240   : > { %1624 = vpow2.f32 %v1060_v50  ;;  %v1004_v62 = vsub.f32 %v1952_v3, %v2133_v25  ;;  %v1076_v39 = vmul.f32 1.442695, %v1000_v58  ;;  %v1005_v63 = vsub.f32 %v1954_v4, %v2137_v29  ;;  %v2201_v58 = vld [vmem:[%s331_s10] sm:$0xff] }
 0x241   : > { %1626 = vpow2.f32 %v1062_v52  ;;  %v1078_v40 = vmul.f32 1.442695, %v1001_v59  ;;  %v1006_v41 = vsub.f32 %v2555_v47, %v2133_v25  ;;  %v1080_v48 = vmul.f32 1.442695, %v1002_v0  ;;  %2557 = vst [vmem:[#allocation6_spill] sm:$0xff] %v2201_v58 }
 0x242   : > { %1628 = vpow2.f32 %v1064_v54  ;;  %v1007_v2 = vsub.f32 %v1958_v6, %v2137_v29  ;;  %v1082_v42 = vmul.f32 1.442695, %v1003_v61  ;;  %v1008_v3 = vsub.f32 %v1960_v7, %v2133_v25  ;;  %v2556_v6 = vld [vmem:[#allocation10_spill] sm:$0xff] }
 0x243   : > { %1630 = vpow2.f32 %v1066_v13  ;;  %v1084_v44 = vmul.f32 1.442695, %v1004_v62  ;;  %v1009_v4 = vsub.f32 %v1962_v8, %v2137_v29  ;;  %v1086_v50 = vmul.f32 1.442695, %v1005_v63 }
 0x244   : > { %1632 = vpow2.f32 %v1068_v38  ;;  %v1010_v52 = vsub.f32 %v2556_v6, %v2133_v25  ;;  %v1088_v7 = vmul.f32 1.442695, %v1006_v41  ;;  %v1011_v45 = vsub.f32 %v1966_v10, %v2137_v29 }
 0x245   : > { %1634 = vpow2.f32 %v1070_v43  ;;  %v1090_v8 = vmul.f32 1.442695, %v1007_v2  ;;  %v1012_v1 = vsub.f32 %v1968_v11, %v2133_v25  ;;  %v1092_v13 = vmul.f32 1.442695, %v1008_v3  ;;  %v2558_v43 = vld [vmem:[#allocation11_spill] sm:$0xff] }
 0x246   : > { %1636 = vpow2.f32 %v1072_v36  ;;  %v1013_v59 = vsub.f32 %v1970_v12, %v2137_v29  ;;  %v1014_v57 = vsub.f32 %v2558_v43, %v2133_v25  ;;  %v1094_v10 = vmul.f32 1.442695, %v1009_v4 }
 0x247   : > { %1638 = vpow2.f32 %v1074_v37  ;;  %v1015_v36 = vsub.f32 %v1974_v14, %v2137_v29  ;;  %v1096_v11 = vmul.f32 1.442695, %v1010_v52  ;;  %v1098_v62 = vmul.f32 1.442695, %v1011_v45 }
 0x248   : > { %1640 = vpow2.f32 %v1076_v39  ;;  %v1298_v39 = vcombine.high %v2201_v58, %v2201_v58  ;;  %v1016_v14 = vsub.f32 %v1976_v15, %v2133_v25  ;;  %v1019_v4 = vsub.f32 %v1982_v18, %v2137_v29 }
 0x249   : > { %v2181_v49 = vpop.eup %1616  ;;  %1642 = vpow2.f32 %v1078_v40  ;;  %v1100_v40 = vmul.f32 1.442695, %v1012_v1  ;;  %v1104_v15 = vmul.f32 1.442695, %v1014_v57  ;;  %v1017_v52 = vsub.f32 %v1978_v16, %v2137_v29 }
 0x24a   : > { %v2189_v51 = vpop.eup %1618  ;;  %1644 = vpow2.f32 %v1080_v48  ;;  %v2559_v48 = vld [vmem:[#allocation12_spill] sm:$0xff]  ;;  %1364 = vmatprep.mubr.f32.mxu0 %v1298_v39  ;;  %v1020_v1 = vsub.f32 %v1984_v19, %v2133_v25  ;;  %v1108_v18 = vmul.f32 1.442695, %v1016_v14  ;;  %v1021_v43 = vsub.f32 %v1986_v20, %v2137_v29 }
 0x24b   : > { %v2193_v46 = vpop.eup %1620  ;;  %1646 = vpow2.f32 %v1082_v42  ;;  %v1018_v2 = vsub.f32 %v2559_v48, %v2133_v25  ;;  %v1102_v42 = vmul.f32 1.442695, %v1013_v59  ;;  %v1114_v19 = vmul.f32 1.442695, %v1019_v4 }
 0x24c   : > { %v2197_v54 = vpop.eup %1622  ;;  %1648 = vpow2.f32 %v1084_v44  ;;  %v1182_v61 = vadd.f32 %v2193_v46, %v2181_v49  ;;  %v1110_v20 = vmul.f32 1.442695, %v1017_v52 }
 0x24d   : > { %v2203_v38 = vpop.eup %1624  ;;  %1650 = vpow2.f32 %v1086_v50  ;;  %v1219_v12 = vadd.f32 %v2197_v54, %v2189_v51  ;;  %v1112_v16 = vmul.f32 1.442695, %v1018_v2 }
 0x24e   : > { %v2209_v0 = vpop.eup %1626  ;;  %1652 = vpow2.f32 %v1088_v7  ;;  %v1183_v47 = vadd.f32 %v2203_v38, %v1182_v61  ;;  %v1106_v7 = vmul.f32 1.442695, %v1015_v36  ;;  %v2560_v36 = vld [vmem:[#allocation13_spill] sm:$0xff] }
 0x24f   : > { %v2215_v37 = vpop.eup %1628  ;;  %1654 = vpow2.f32 %v1090_v8  ;;  %v1220_v3 = vadd.f32 %v2209_v0, %v1219_v12  ;;  %v1023_v12 = vsub.f32 %v1990_v22, %v2137_v29  ;;  %v1118_v22 = vmul.f32 1.442695, %v1021_v43 }
 0x250   : > { %v2221_v63 = vpop.eup %1630  ;;  %1656 = vpow2.f32 %v1092_v13  ;;  %v1184_v50 = vadd.f32 %v2215_v37, %v1183_v47  ;;  %v1116_v47 = vmul.f32 1.442695, %v1020_v1 }
 0x251   : > { %v2226_v41 = vpop.eup %1632  ;;  %1658 = vpow2.f32 %v1094_v10  ;;  %v1221_v45 = vadd.f32 %v2221_v63, %v1220_v3 }
 0x252   : > { %v2231_v44 = vpop.eup %1634  ;;  %1660 = vpow2.f32 %v1096_v11  ;;  %v1185_v13 = vadd.f32 %v2226_v41, %v1184_v50  ;;  %v1022_v11 = vsub.f32 %v2560_v36, %v2133_v25  ;;  %v1029_v36 = vsub.f32 %v2002_v28, %v2137_v29 }
 0x253   : > { %v2236_v6 = vpop.eup %1636  ;;  %1662 = vpow2.f32 %v1098_v62  ;;  %v1222_v57 = vadd.f32 %v2231_v44, %v1221_v45  ;;  %v1027_v45 = vsub.f32 %v1998_v26, %v2137_v29 }
 0x254   : > { %v2241_v8 = vpop.eup %1638  ;;  %1664 = vpow2.f32 %v1100_v40  ;;  %v1186_v61 = vadd.f32 %v2236_v6, %v1185_v13  ;;  %v1024_v40 = vsub.f32 %v1992_v23, %v2133_v25  ;;  %v1120_v23 = vmul.f32 1.442695, %v1022_v11 }
 0x255   : > { %v2246_v59 = vpop.eup %1640  ;;  %1666 = vpow2.f32 %v1102_v42  ;;  %v1223_v39 = vadd.f32 %v2241_v8, %v1222_v57  ;;  %v1025_v42 = vsub.f32 %v1994_v24, %v2137_v29  ;;  %v1122_v24 = vmul.f32 1.442695, %v1023_v12 }
 0x256   : > { %v2251_v10 = vpop.eup %1642  ;;  %1668 = vpow2.f32 %v1104_v15  ;;  %v1187_v48 = vadd.f32 %v2246_v59, %v1186_v61  ;;  %v2561_v15 = vld [vmem:[#allocation14_spill] sm:$0xff]  ;;  %v1028_v13 = vsub.f32 %v2000_v27, %v2133_v25  ;;  %v1124_v43 = vmul.f32 1.442695, %v1024_v40  ;;  %v2562_v61 = vld [vmem:[#allocation15_spill] sm:$0xff] }
 0x257   : > { %v2256_v62 = vpop.eup %1644  ;;  %1670 = vpow2.f32 %v1106_v7  ;;  %v1224_v3 = vadd.f32 %v2251_v10, %v1223_v39  ;;  %v1026_v50 = vsub.f32 %v2561_v15, %v2133_v25  ;;  %v1126_v26 = vmul.f32 1.442695, %v1025_v42 }
 0x258   : > { %v2261_v14 = vpop.eup %1646  ;;  %1672 = vpow2.f32 %v1108_v18  ;;  %v1188_v52 = vadd.f32 %v2256_v62, %v1187_v48  ;;  %v1030_v12 = vsub.f32 %v2562_v61, %v2133_v25  ;;  %v1031_v40 = vsub.f32 %v2006_v30, %v2137_v29 }
 0x259   : > { %v2266_v2 = vpop.eup %1648  ;;  %1674 = vpow2.f32 %v1112_v16  ;;  %v1225_v1 = vadd.f32 %v2261_v14, %v1224_v3  ;;  %v1128_v27 = vmul.f32 1.442695, %v1026_v50  ;;  %v1130_v28 = vmul.f32 1.442695, %v1027_v45  ;;  %v2563_v45 = vld [vmem:[#allocation16_spill] sm:$0xff] }
 0x25a   : > { %v2271_v4 = vpop.eup %1650  ;;  %1676 = vpow2.f32 %v1114_v19  ;;  %v1189_v16 = vadd.f32 %v2266_v2, %v1188_v52  ;;  %v1032_v42 = vsub.f32 %v2008_v31, %v2133_v25  ;;  %v1033_v50 = vsub.f32 %v2010_v32, %v2137_v29 }
 0x25b   : > { %v2276_v7 = vpop.eup %1652  ;;  %1678 = vpow2.f32 %v1110_v20  ;;  %v1226_v11 = vadd.f32 %v2271_v4, %v1225_v1  ;;  %v1134_v30 = vmul.f32 1.442695, %v1029_v36  ;;  %v1136_v31 = vmul.f32 1.442695, %v1030_v12  ;;  %v2564_v12 = vld [vmem:[#allocation17_spill] sm:$0xff] }
 0x25c   : > { %v2281_v18 = vpop.eup %1654  ;;  %1680 = vpow2.f32 %v1116_v47  ;;  %v1190_v20 = vadd.f32 %v2276_v7, %v1189_v16  ;;  %v1138_v16 = vmul.f32 1.442695, %v1031_v40  ;;  %v2565_v40 = vld [vmem:[#allocation18_spill] sm:$0xff] }
 0x25d   : > { %v2286_v57 = vpop.eup %1656  ;;  %1682 = vpow2.f32 %v1118_v22  ;;  %v1227_v47 = vadd.f32 %v2281_v18, %v1226_v11  ;;  %v1132_v22 = vmul.f32 1.442695, %v1028_v13  ;;  %v1140_v11 = vmul.f32 1.442695, %v1032_v42  ;;  %v2566_v42 = vld [vmem:[#allocation19_spill] sm:$0xff] }
 0x25e   : > { %v2291_v19 = vpop.eup %1658  ;;  %1684 = vpow2.f32 %v1120_v23  ;;  %v1191_v3 = vadd.f32 %v2286_v57, %v1190_v20  ;;  %v1037_v20 = vsub.f32 %v2564_v12, %v2137_v29 }
 0x25f   : > { %v2296_v39 = vpop.eup %1660  ;;  %1686 = vpow2.f32 %v1122_v24  ;;  %v1228_v23 = vadd.f32 %v2291_v19, %v1227_v47  ;;  %v1034_v24 = vsub.f32 %v2563_v45, %v2133_v25  ;;  %v1142_v47 = vmul.f32 1.442695, %v1033_v50 }
 0x260   : > { %v2301_v48 = vpop.eup %1662  ;;  %1688 = vpow2.f32 %v1124_v43  ;;  %v1192_v1 = vadd.f32 %v2296_v39, %v1191_v3  ;;  %v1035_v43 = vsub.f32 %v2014_v34, %v2137_v29  ;;  %v1038_v3 = vsub.f32 %v2565_v40, %v2133_v25 }
 0x261   : > { %v2306_v15 = vpop.eup %1664  ;;  %1690 = vpow2.f32 %v1126_v26  ;;  %v1229_v32 = vadd.f32 %v2301_v48, %v1228_v23  ;;  %v1036_v26 = vsub.f32 %v2016_v35, %v2133_v25  ;;  %v1144_v23 = vmul.f32 1.442695, %v1034_v24  ;;  %v2568_v24 = vld [vmem:[#allocation21_spill] sm:$0xff] }
 0x262   : > { %v2311_v52 = vpop.eup %1666  ;;  %1692 = vpow2.f32 %v1128_v27  ;;  %v1193_v61 = vadd.f32 %v2306_v15, %v1192_v1  ;;  %v1146_v1 = vmul.f32 1.442695, %v1035_v43  ;;  %v2569_v43 = vld [vmem:[#allocation22_spill] sm:$0xff] }
 0x263   : > { %v1669_v13 = vpop.eup %1668  ;;  %1694 = vpow2.f32 %v1130_v28  ;;  %v1230_v34 = vadd.f32 %v2311_v52, %v1229_v32  ;;  %v1148_v32 = vmul.f32 1.442695, %v1036_v26 }
 0x264   : > { %v1671_v36 = vpop.eup %1670  ;;  %1696 = vpow2.f32 %v1132_v22  ;;  %v1194_v45 = vadd.f32 %v1669_v13, %v1193_v61  ;;  %v1039_v22 = vsub.f32 %v2566_v42, %v2137_v29  ;;  %v1150_v61 = vmul.f32 1.442695, %v1037_v20  ;;  %v2571_v20 = vld [vmem:[#allocation24_spill] sm:$0xff] }
 0x265   : > { %v1673_v27 = vpop.eup %1672  ;;  %1698 = vpow2.f32 %v1134_v30  ;;  %v1231_v60 = vadd.f32 %v1671_v36, %v1230_v34  ;;  %v2567_v30 = vld [vmem:[#allocation20_spill] sm:$0xff]  ;;  %v1042_v34 = vsub.f32 %v2569_v43, %v2133_v25  ;;  %v1152_v42 = vmul.f32 1.442695, %v1038_v3 }
 0x266   : > { %v1675_v28 = vpop.eup %1674  ;;  %1700 = vpow2.f32 %v1136_v31  ;;  %v1040_v50 = vsub.f32 %v2567_v30, %v2133_v25  ;;  %v1195_v12 = vadd.f32 %v1673_v27, %v1194_v45  ;;  %v1041_v31 = vsub.f32 %v2568_v24, %v2137_v29  ;;  %v2570_v45 = vld [vmem:[#allocation23_spill] sm:$0xff] }
 0x267   : > { %v1677_v35 = vpop.eup %1676  ;;  %1702 = vpow2.f32 %v1138_v16  ;;  %v1043_v30 = vsub.f32 %v2570_v45, %v2137_v29  ;;  %v1154_v24 = vmul.f32 1.442695, %v1039_v22  ;;  %v1044_v58 = vsub.f32 %v2571_v20, %v2133_v25  ;;  %v2573_v22 = vld [vmem:[#allocation26_spill] sm:$0xff] }
 0x268   : > { %v1679_v21 = vpop.eup %1678  ;;  %1704 = vpow2.f32 %v1140_v11  ;;  %1300 = vmatprep.subr.mxu0 %v1677_v35  ;;  %v1196_v11 = vadd.f32 %v1675_v28, %v1195_v12  ;;  %v1156_v43 = vmul.f32 1.442695, %v1040_v50  ;;  %v1046_v12 = vsub.f32 %v2573_v22, %v2133_v25 }
 0x269   : > { %v2331_v17 = vpop.eup %1680  ;;  %1706 = vpow2.f32 %v1142_v47  ;;  %v1232_v40 = vadd.f32 %v1679_v21, %v1231_v60  ;;  %1301 = vmatpush1.msra.mxu0 %v1675_v28  ;;  %v2572_v28 = vld [vmem:[#allocation25_spill] sm:$0xff]  ;;  %v1160_v50 = vmul.f32 1.442695, %v1042_v34  ;;  %v1164_v45 = vmul.f32 1.442695, %v1044_v58 }
 0x26a   : > { %v2335_v16 = vpop.eup %1682  ;;  %1708 = vpow2.f32 %v1144_v23  ;;  %1302 = vmatprep.subr.mxu0 %v1679_v21  ;;  %v1197_v3 = vadd.f32 %v2331_v17, %v1196_v11  ;;  %v1045_v23 = vsub.f32 %v2572_v28, %v2137_v29  ;;  %v1051_v58 = vsub.f32 %v2108_v5, %v2137_v29 }
 0x26b   : > { %v2339_v26 = vpop.eup %1684  ;;  %1710 = vpow2.f32 %v1146_v1  ;;  %v1233_v47 = vadd.f32 %v1677_v35, %v1232_v40  ;;  %1303 = vmatpush1.msra.mxu0 %v1673_v27  ;;  %v1158_v1 = vmul.f32 1.442695, %v1041_v31  ;;  %v2574_v40 = vld [vmem:[#allocation27_spill] sm:$0xff]  ;;  %v1162_v31 = vmul.f32 1.442695, %v1043_v30 }
 0x26c   : > { %v2343_v60 = vpop.eup %1686  ;;  %1712 = vpow2.f32 %v1148_v32  ;;  %1304 = vmatprep.subr.mxu0 %v1671_v36  ;;  %v1198_v32 = vadd.f32 %v2339_v26, %v1197_v3  ;;  %v1049_v30 = vsub.f32 %v2096_v33, %v2137_v29  ;;  %v2576_v33 = vld [vmem:[#allocation29_spill] sm:$0xff] }
 0x26d   : > { %v2348_v21 = vpop.eup %1688  ;;  %1714 = vpow2.f32 %v1150_v61  ;;  %v1234_v35 = vadd.f32 %v2335_v16, %v1233_v47  ;;  %1305 = vmatpush1.msra.mxu0 %v1669_v13  ;;  %v1047_v61 = vsub.f32 %v2574_v40, %v2137_v29  ;;  %v1050_v28 = vsub.f32 %v2576_v33, %v2133_v25 }
 0x26e   : > { %v2353_v27 = vpop.eup %1690  ;;  %1716 = vpow2.f32 %v1152_v42  ;;  %1306 = vmatprep.subr.mxu0 %v2311_v52  ;;  %v2575_v42 = vld [vmem:[#allocation28_spill] sm:$0xff]  ;;  %v1199_v52 = vadd.f32 %v2348_v21, %v1198_v32 }
 0x26f   : > { %v2359_v36 = vpop.eup %1692  ;;  %1718 = vpow2.f32 %v1154_v24  ;;  %v1235_v13 = vadd.f32 %v2343_v60, %v1234_v35  ;;  %1307 = vmatpush1.msra.mxu0 %v2306_v15  ;;  %v1048_v34 = vsub.f32 %v2575_v42, %v2133_v25  ;;  %v1166_v24 = vmul.f32 1.442695, %v1045_v23 }
 0x270   : > { %v2365_v11 = vpop.eup %1694  ;;  %1720 = vpow2.f32 %v1156_v43  ;;  %1308 = vmatprep.subr.mxu0 %v2301_v48  ;;  %v1168_v43 = vmul.f32 1.442695, %v1046_v12  ;;  %v1200_v48 = vadd.f32 %v2359_v36, %v1199_v52  ;;  %v1170_v23 = vmul.f32 1.442695, %v1047_v61 }
 0x271   : > { %v2371_v47 = vpop.eup %1696  ;;  %1722 = vpow2.f32 %v1158_v1  ;;  %v1236_v15 = vadd.f32 %v2353_v27, %v1235_v13  ;;  %1309 = vmatpush1.msra.mxu0 %v2296_v39  ;;  %v1172_v5 = vmul.f32 1.442695, %v1048_v34  ;;  %v1174_v35 = vmul.f32 1.442695, %v1049_v30 }
 0x272   : > { %v2377_v20 = vpop.eup %1698  ;;  %1724 = vpow2.f32 %v1160_v50  ;;  %1310 = vmatprep.subr.mxu0 %v2291_v19  ;;  %v1201_v29 = vadd.f32 %v2371_v47, %v1200_v48 }
 0x273   : > { %v2383_v3 = vpop.eup %1700  ;;  %1726 = vpow2.f32 %v1162_v31  ;;  %v1237_v39 = vadd.f32 %v2365_v11, %v1236_v15  ;;  %1311 = vmatpush1.msra.mxu0 %v2286_v57  ;;  %v1178_v57 = vmul.f32 1.442695, %v1051_v58 }
 0x274   : > { %v2389_v1 = vpop.eup %1702  ;;  %1728 = vpow2.f32 %v1164_v45  ;;  %1312 = vmatprep.subr.mxu0 %v2281_v18  ;;  %v1202_v12 = vadd.f32 %v2383_v3, %v1201_v29  ;;  %v1176_v18 = vmul.f32 1.442695, %v1050_v28 }
 0x275   : > { %v2393_v19 = vpop.eup %1704  ;;  %1730 = vpow2.f32 %v1166_v24  ;;  %v1238_v25 = vadd.f32 %v2377_v20, %v1237_v39  ;;  %1313 = vmatpush1.msra.mxu0 %v2276_v7 }
 0x276   : > { %v2397_v22 = vpop.eup %1706  ;;  %1732 = vpow2.f32 %v1168_v43  ;;  %1314 = vmatprep.subr.mxu0 %v2271_v4  ;;  %v1203_v7 = vadd.f32 %v2393_v19, %v1202_v12 }
 0x277   : > { %v2401_v50 = vpop.eup %1708  ;;  %1734 = vpow2.f32 %v1170_v23  ;;  %v1239_v32 = vadd.f32 %v2389_v1, %v1238_v25  ;;  %1315 = vmatpush1.msra.mxu0 %v2266_v2 }
 0x278   : > { %v2405_v40 = vpop.eup %1710  ;;  %1736 = vpow2.f32 %v1172_v5  ;;  %1316 = vmatprep.subr.mxu0 %v2261_v14  ;;  %v1204_v13 = vadd.f32 %v2401_v50, %v1203_v7 }
 0x279   : > { %v2409_v61 = vpop.eup %1712  ;;  %1738 = vpow2.f32 %v1174_v35  ;;  %v1240_v4 = vadd.f32 %v2397_v22, %v1239_v32  ;;  %1317 = vmatpush1.msra.mxu0 %v2256_v62 }
 0x27a   : > { %v2413_v31 = vpop.eup %1714  ;;  %1740 = vpow2.f32 %v1178_v57  ;;  %1318 = vmatprep.subr.mxu0 %v2251_v10  ;;  %v1205_v34 = vadd.f32 %v2409_v61, %v1204_v13 }
 0x27b   : > { %v2417_v2 = vpop.eup %1716  ;;  %1742 = vpow2.f32 %v1176_v18  ;;  %v1241_v42 = vadd.f32 %v2405_v40, %v1240_v4  ;;  %1319 = vmatpush1.msra.mxu0 %v2246_v59 }
 0x27c   : > { %v2421_v14 = vpop.eup %1718  ;;  %1320 = vmatprep.subr.mxu0 %v2241_v8  ;;  %v1206_v10 = vadd.f32 %v2417_v2, %v1205_v34 }
 0x27d   : > { %v1721_v62 = vpop.eup %1720  ;;  %v1242_v45 = vadd.f32 %v2413_v31, %v1241_v42  ;;  %1321 = vmatpush1.msra.mxu0 %v2236_v6 }
 0x27e   : > { %v1723_v52 = vpop.eup %1722  ;;  %1322 = vmatprep.subr.mxu0 %v2231_v44  ;;  %v1207_v15 = vadd.f32 %v1721_v62, %v1206_v10 }
 0x27f   : > { %v1725_v30 = vpop.eup %1724  ;;  %v1243_v24 = vadd.f32 %v2421_v14, %v1242_v45  ;;  %1323 = vmatpush1.msra.mxu0 %v2226_v41 }
 0x280   : > { %v1727_v59 = vpop.eup %1726  ;;  %1324 = vmatprep.subr.mxu0 %v2221_v63  ;;  %v1208_v6 = vadd.f32 %v1725_v30, %v1207_v15 }
 0x281   : > { %v1729_v8 = vpop.eup %1728  ;;  %v1244_v58 = vadd.f32 %v1723_v52, %v1243_v24  ;;  %1325 = vmatpush1.msra.mxu0 %v2215_v37 }
 0x282   : > { %v1731_v43 = vpop.eup %1730  ;;  %1326 = vmatprep.subr.mxu0 %v2209_v0  ;;  %v1209_v28 = vadd.f32 %v1729_v8, %v1208_v6 }
 0x283   : > { %v1733_v48 = vpop.eup %1732  ;;  %v1245_v33 = vadd.f32 %v1727_v59, %v1244_v58  ;;  %1327 = vmatpush1.msra.mxu0 %v2203_v38  ;;  %v2577_v38 = vsub.f32 %v2116_v53, %v2120_v9 }
 0x284   : > { %v1735_v44 = vpop.eup %1734  ;;  %1328 = vmatprep.subr.mxu0 %v2197_v54  ;;  %v1210_v39 = vadd.f32 %v1733_v48, %v1209_v28 }
 0x285   : > { %v1737_v41 = vpop.eup %1736  ;;  %v1246_v23 = vadd.f32 %v1731_v43, %v1245_v33  ;;  %1329 = vmatpush1.msra.mxu0 %v2193_v46  ;;  %v975_v35 = vmul.f32 1.442695, %v2577_v38 }
 0x286   : > { %v1739_v63 = vpop.eup %1738  ;;  %1330 = vmatprep.subr.mxu0 %v2189_v51  ;;  %v1211_v29 = vadd.f32 %v1737_v41, %v1210_v39 }
 0x287   : > { %v1741_v37 = vpop.eup %1740  ;;  %v1247_v5 = vadd.f32 %v1735_v44, %v1246_v23  ;;  %1331 = vmatpush1.msra.mxu0 %v2181_v49  ;;  %1744 = vpow2.f32 %v975_v35 }
 0x288   : > { %v1743_v0 = vpop.eup %1742  ;;  %1332 = vmatprep.subr.mxu0 %v1741_v37 }
 0x289   : > { %v1248_v54 = vadd.f32 %v1739_v63, %v1247_v5  ;;  %1333 = vmatpush2.msra.mxu0 %v1743_v0  ;;  %v1212_v25 = vadd.f32 %v1743_v0, %v1211_v29 }
 0x28a   : > { %1334 = vmatprep.subr.mxu0 %v1739_v63 }
 0x28b   : > { %v1249_v46 = vadd.f32 %v1741_v37, %v1248_v54  ;;  %1335 = vmatpush2.msra.mxu0 %v1737_v41  ;;  %v1213_v57 = vrot.slane %v1212_v25, 4 }
 0x28c   : > { %1336 = vmatprep.subr.mxu0 %v1735_v44 }
 0x28d   : > { %v1250_v51 = vrot.slane %v1249_v46, 4  ;;  %1337 = vmatpush2.msra.mxu0 %v1733_v48  ;;  %v1214_v12 = vadd.f32 %v1213_v57, %v1212_v25 }
 0x28e   : > { %1338 = vmatprep.subr.mxu0 %v1731_v43 }
 0x28f   : > { %v1251_v49 = vadd.f32 %v1250_v51, %v1249_v46  ;;  %1339 = vmatpush2.msra.mxu0 %v1729_v8  ;;  %v1215_v18 = vrot.slane %v1214_v12, 2 }
 0x290   : > { %1340 = vmatprep.subr.mxu0 %v1727_v59 }
 0x291   : > { %v1252_v32 = vrot.slane %v1251_v49, 2  ;;  %1341 = vmatpush2.msra.mxu0 %v1725_v30  ;;  %v1216_v53 = vadd.f32 %v1215_v18, %v1214_v12 }
 0x292   : > { %1342 = vmatprep.subr.mxu0 %v1723_v52  ;;  %v1180_v52 = vld [vmem:[#allocation4] sm:$0x3] }
 0x293   : > { %v1253_v9 = vadd.f32 %v1252_v32, %v1251_v49  ;;  %1343 = vmatpush2.msra.mxu0 %v1721_v62  ;;  %v1217_v7 = vrot.slane %v1216_v53, 1 }
 0x294   : > { %1344 = vmatprep.subr.mxu0 %v2421_v14  ;;  %v1745_v45 = vpop.eup %1744 }
 0x295   : > { %v1254_v4 = vrot.slane %v1253_v9, 1  ;;  %1345 = vmatpush2.msra.mxu0 %v2417_v2  ;;  %v1218_v13 = vadd.f32 %v1217_v7, %v1216_v53  ;;  %v1181_v2 = vmul.f32 %v1745_v45, %v1180_v52 }
 0x296   : > { %1346 = vmatprep.subr.mxu0 %v2413_v31 }
 0x297   : > { %v1255_v42 = vadd.f32 %v1254_v4, %v1253_v9  ;;  %1347 = vmatpush2.msra.mxu0 %v2409_v61 }
 0x298   : > { %1348 = vmatprep.subr.mxu0 %v2405_v40 }
 0x299   : > { %v1258_v34 = vcombine.low %v1218_v13, %v1255_v42  ;;  %1349 = vmatpush2.msra.mxu0 %v2401_v50 }
 0x29a   : > { %1350 = vmatprep.subr.mxu0 %v2397_v22 }
 0x29b   : > { %v1265_v14 = vrot.slane %v1258_v34, %v2113_v56  ;;  %1351 = vmatpush2.msra.mxu0 %v2393_v19 }
 0x29c   : > { %1352 = vmatprep.subr.mxu0 %v2389_v1  ;;  %v2581_v1 = vmov 0.0  }
 0x29d   : > { %v1272_v31 = vrot.slane %v1265_v14, %v2113_v56  ;;  %1353 = vmatpush2.msra.mxu0 %v2383_v3  ;;  %v2578_v56 = vld [vmem:[#allocation6_spill] sm:$0xff]  ;;  %v2580_v3 = vld [vmem:[#allocation31_spill] sm:$0xff] }
 0x29e   : > { %1354 = vmatprep.subr.mxu0 %v2377_v20  ;;  %v2579_v20 = vld [vmem:[#allocation30_spill] sm:$0xff] }
 0x29f   : > { %v1274_v40 = vadd.f32 %v1272_v31, %v1181_v2  ;;  %1355 = vmatpush2.msra.mxu0 %v2371_v47 }
 0x2a0   : > { %1356 = vmatprep.subr.mxu0 %v2365_v11 }
 0x2a1   : > { %1279 = vst.msk [vmem:[#allocation4] sm:$0x3] %vm1925_vm2, %v1274_v40  ;;  %1357 = vmatpush2.msra.mxu0 %v2359_v36 }
 0x2a2   : > { %1358 = vmatprep.subr.mxu0 %v2353_v27  ;;  %v1285_v27 = vrot.slane %v1745_v45, %v2579_v20 }
 0x2a3   : > { %1359 = vmatpush2.msra.mxu0 %v2348_v21  ;;  %v1289_v21 = vrot.slane %v1745_v45, %v2580_v3 }
 0x2a4   : > { %1360 = vmatprep.subr.mxu0 %v2343_v60  ;;  %v1293_v60 = vcombine.high %v2581_v1, %v2581_v1 }
 0x2a5   : > { %1361 = vmatpush2.msra.mxu0 %v2339_v26 }
 0x2a6   : > { %1362 = vmatprep.subr.mxu0 %v2335_v16  ;;  %v1295_v16 = vmul.f32 0.0, %v1285_v27  ;;  %v1296_v22 = vmul.f32 %v1293_v60, %v1289_v21 }
 0x2a7   : > { %1363 = vmatpush2.msra.mxu0 %v2331_v17 }
 0x2a8   : > { %1365 = vmatmul.mubr.f32.vlgmr.msra.gmra.mxu0 %v2578_v56  ;;  %v1382_v11 = vld [vmem:[#allocation4] sm:$0x3] }
 0x2a9   : > { %1746 = vrcp.f32 %v1382_v11 }
 0x2b6   : > { %v1747_v55 = vpop.eup %1746 }
 0x2b7   : > { %v1384_v47 = vmul.f32 %v1747_v55, %v1382_v11 }
 0x2b9   : > { %v1385_v36 = vsub.f32 2.0, %v1384_v47 }
 0x2bb   : > { %v1386_v26 = vmul.f32 %v1747_v55, %v1385_v36 }
 0x2bd   : > { %v1392_v17 = vrot.slane %v1386_v26, %v2579_v20  ;;  %v1396_v50 = vrot.slane %v1386_v26, %v2580_v3 }
 0x2bf   : > { %v1397_v24 = vcombine.low %v1392_v17, %v1396_v50 }
 0x368   : > { %v1366_v19 = vpop.f32.mrf.mxu0 }
 0x369   : > { %v1371_v62 = vadd.f32 %v1366_v19, %v1295_v16 }
 0x36a   : > { %v1368_v61 = vpop.f32.mrf.mxu0 }
 0x36b   : > { %v1372_v10 = vadd.f32 %v1368_v61, %v1296_v22 }
 0x36d   : > { %v1375_v30 = vcombine.low %v1371_v62, %v1372_v10 }
 0x36f   : > { %v1399_v59 = vmul.f32 %v1397_v24, %v1375_v30 }
 0x371   : > { %1400 = vst [vmem:[%s341_s13] sm:$0xff] %v1399_v59 }
 0x372 PF: > { %s15_s20 = sadd.s32 1, %s1770_s20   ;;  %s2582_s18 = smov %s1766_s19 }
 0x373   : > { %p12_p5 = scmp.ge.s32.totalorder %s15_s20, 4   ;;  %s2583_s19 = smov %s2585_s21 }
 0x375   :  { %14 = sbr.rel (!%p12_p5) target bundleno = 2 (0x2), region = 84 }

</bundles_post_ra>
